<compile_context>
chip_gen: v7x
topology: tpu7x:2x2x1
jax: 0.10.0
libtpu: 0.0.40
codegen_flags: <defaults>
</compile_context>

<pallas_src>
import functools

import jax
import jax.numpy as jnp
from jax.experimental import pallas as pl
from jax.experimental.pallas import tpu as pltpu


# ---------------------------------------------------------------------------
# Pallas kernel
# ---------------------------------------------------------------------------
def _mm_bf16(a, b, dims):
    """MXU matmul: bf16 operands, f32 accumulation, given contracting dims."""
    return jax.lax.dot_general(
        a.astype(jnp.bfloat16), b.astype(jnp.bfloat16),
        (dims, ((), ())), preferred_element_type=jnp.float32)


def _nmf2d_kernel(x_ref, bases_ref, out_ref, *, steps, inv_t, eps):
    """One (B*S) slab: x (D, N) bf16, bases (D, R) f32 -> out (D, N) f32.

    coef is carried transposed as cT = coef^T with shape (R, N) so that N (= H*W,
    a multiple of 128 in practice) is always the lane axis and x never needs a
    transpose: every x-contraction uses x in its natural (D, N) orientation.
    """
    x = x_ref[...]                                   # (D, N) bf16
    bases = bases_ref[...].astype(jnp.float32)       # (D, R) f32

    def xt_b(bases_):
        # (x^T @ bases)^T = bases^T @ x  -> (R, N); only the small bases operand
        # is in transposed orientation, x stays (D, N).
        return _mm_bf16(bases_, x, ((0,), (0,)))

    # --- local_inference prologue: coef = softmax(inv_t * x^T @ bases) ---------
    xtb = xt_b(bases)                                # (R, N), reused as step-0 num_c
    logits = inv_t * xtb
    logits = logits - jnp.max(logits, axis=0, keepdims=True)
    p = jnp.exp(logits)
    cT = p * pl.reciprocal(jnp.sum(p, axis=0, keepdims=True), approx=True)  # (R, N)

    def coef_update(cT_, bases_, num_cT):
        btb = _mm_bf16(bases_, bases_, ((0,), (0,)))   # bases^T @ bases    (R, R)
        den_cT = _mm_bf16(btb, cT_, ((1,), (0,)))      # (coef @ btb)^T     (R, N)
        return cT_ * num_cT * pl.reciprocal(den_cT + eps, approx=True)

    def bases_update(cT_, bases_):
        num_b = _mm_bf16(x, cT_, ((1,), (1,)))         # x @ coef           (D, R)
        ctc = _mm_bf16(cT_, cT_, ((1,), (1,)))         # coef^T @ coef      (R, R)
        den_b = _mm_bf16(bases_, ctc, ((1,), (0,)))    # bases @ ctc        (D, R)
        return bases_ * num_b * pl.reciprocal(den_b + eps, approx=True)

    # --- step 0 peeled: bases unchanged since prologue, so num_c == xtb --------
    cT = coef_update(cT, bases, xtb)
    bases = bases_update(cT, bases)

    # --- remaining steps-1 NMF multiplicative updates (bounded live ranges) ----
    def body(_, carry):
        cT_, bases_ = carry
        cT_ = coef_update(cT_, bases_, xt_b(bases_))
        bases_ = bases_update(cT_, bases_)
        return cT_, bases_

    cT, bases = jax.lax.fori_loop(1, steps, body, (cT, bases))

    # --- compute_coef: one final coef-only update -------------------------------
    cT = coef_update(cT, bases, xt_b(bases))

    # --- reconstruction: bases @ coef^T -> (D, N), lane-dense output -----------
    out_ref[...] = _mm_bf16(bases, cT, ((1,), (0,))).astype(out_ref.dtype)


def _vmem_limit_bytes():
    """~100 MiB on 128 MiB parts (v5e/v6e), ~56 MiB on 64 MiB parts (v7x)."""
    try:
        phys = int(pltpu.get_tpu_info().vmem_capacity_bytes)
    except Exception:
        phys = 64 << 20
    return int(min(phys - (8 << 20), 100 << 20))


def nmf2d_pallas(x_dn, bases0, *, steps, inv_t, eps=1e-6):
    """x_dn: (BS, D, N) float, bases0: (BS, D, R) f32 -> (BS, D, N) f32."""
    BS, D, N = x_dn.shape
    R = bases0.shape[-1]
    steps = int(steps)
    assert steps >= 1, "NMF needs at least one multiplicative-update step"

    kernel = functools.partial(
        _nmf2d_kernel, steps=steps, inv_t=float(inv_t), eps=float(eps))

    # bf16 x at the boundary: halves the double-buffered input block and HBM read.
    x_bf16 = x_dn.astype(jnp.bfloat16)
    bases0 = bases0.astype(jnp.float32)

    return pl.pallas_call(
        kernel,
        out_shape=jax.ShapeDtypeStruct((BS, D, N), jnp.float32),
        grid=(BS,),
        in_specs=[
            pl.BlockSpec((None, D, N), lambda b: (b, 0, 0)),
            pl.BlockSpec((None, D, R), lambda b: (b, 0, 0)),
        ],
        out_specs=pl.BlockSpec((None, D, N), lambda b: (b, 0, 0)),
        compiler_params=pltpu.CompilerParams(
            dimension_semantics=("parallel",),      # shard slabs across TCs on v7x
            vmem_limit_bytes=_vmem_limit_bytes(),
        ),
    )(x_bf16, bases0)


# ---------------------------------------------------------------------------
# Module wrapper (mirrors _MatrixDecomposition2DBase.forward)
# ---------------------------------------------------------------------------
def _build_bases(key, num, S, D, R):
    """NMF2D._build_bases: uniform random bases, L2-normalized along D."""
    bases = jax.random.uniform(key, (num * S, D, R), dtype=jnp.float32)
    norm = jnp.sqrt(jnp.sum(bases * bases, axis=1, keepdims=True))
    return bases / jnp.maximum(norm, 1e-12)


class MatrixDecomposition2D:
    """JAX/Pallas port of _MatrixDecomposition2DBase with NMF2D update rules.

    NOTE: NMF multiplicative updates assume non-negative x (SegNeXt applies ReLU
    upstream of this module).
    """

    def __init__(self, args=None):
        args = dict(args or {})
        self.spatial = args.setdefault('SPATIAL', True)
        self.S = args.setdefault('MD_S', 1)
        self.D = args.setdefault('MD_D', 512)      # unused by forward (D derived from x)
        self.R = args.setdefault('MD_R', 64)
        self.train_steps = args.setdefault('TRAIN_STEPS', 6)
        self.eval_steps = args.setdefault('EVAL_STEPS', 7)
        self.inv_t = args.setdefault('INV_T', 100)
        self.eta = args.setdefault('ETA', 0.9)
        self.rand_init = args.setdefault('RAND_INIT', True)
        self._cached_bases = None                  # emulates register_buffer('bases', ...)
        # TODO(synk): the eta EMA online update of cached bases (rand_init=False
        # training path of the NMF2D subclass) is not implemented here.

    def __call__(self, x, key, training=False):
        B, C, H, W = x.shape
        S, R = self.S, self.R
        if self.spatial:
            D = C // S
            N = H * W
            x_dn = x.reshape(B * S, D, N)
        else:
            D = H * W
            N = C // S
            x_dn = jnp.transpose(x.reshape(B * S, N, D), (0, 2, 1))

        if self.rand_init:
            bases = _build_bases(key, B, S, D, R)
        else:
            if self._cached_bases is None:
                self._cached_bases = _build_bases(key, 1, S, D, R)
            bases = jnp.tile(self._cached_bases, (B, 1, 1))

        steps = self.train_steps if training else self.eval_steps
        out = nmf2d_pallas(x_dn, bases, steps=steps, inv_t=self.inv_t)

        if self.spatial:
            out = out.reshape(B, C, H, W)
        else:
            out = jnp.transpose(out, (0, 2, 1)).reshape(B, C, H, W)
        return out


# ---------------------------------------------------------------------------
# Pure-JAX reference mirroring the kernel's numerics (bf16 MXU inputs, f32 accum,
# exact division instead of approx reciprocal) for the self-check.
# ---------------------------------------------------------------------------
def _nmf2d_reference(x_dn, bases0, steps, inv_t, eps=1e-6):
    def mm(a, b, dims):
        return jax.lax.dot_general(
            a.astype(jnp.bfloat16), b.astype(jnp.bfloat16),
            (dims, ((), ())), preferred_element_type=jnp.float32)

    def one(x, bases):
        xtb = mm(bases, x, ((0,), (0,)))                     # (R, N)
        cT = jax.nn.softmax(inv_t * xtb, axis=0)

        def coef_update(cT_, bases_, num):
            btb = mm(bases_, bases_, ((0,), (0,)))
            den = mm(btb, cT_, ((1,), (0,)))
            return cT_ * num / (den + eps)

        def bases_update(cT_, bases_):
            num = mm(x, cT_, ((1,), (1,)))
            ctc = mm(cT_, cT_, ((1,), (1,)))
            den = mm(bases_, ctc, ((1,), (0,)))
            return bases_ * num / (den + eps)

        cT = coef_update(cT, bases, xtb)
        bases = bases_update(cT, bases)
        for _ in range(steps - 1):
            cT = coef_update(cT, bases, mm(bases, x, ((0,), (0,))))
            bases = bases_update(cT, bases)
        cT = coef_update(cT, bases, mm(bases, x, ((0,), (0,))))
        return mm(bases, cT, ((1,), (0,)))

    return jax.vmap(one)(x_dn, bases0)


# ---------------------------------------------------------------------------
# Demo / self-check
# ---------------------------------------------------------------------------
if __name__ == "__main__":
    key = jax.random.PRNGKey(0)
    kx, kb = jax.random.split(key)

    # Small shapes consistent with the module: B=2, C=64 (-> D=64), H=W=16 (-> N=256), R=64.
    B, C, H, W = 2, 64, 16, 16
    # NMF expects non-negative inputs (SegNeXt applies ReLU before the decomposition).
    x = jax.random.uniform(kx, (B, C, H, W), dtype=jnp.float32)

    md = MatrixDecomposition2D(dict(MD_S=1, MD_R=64))
    fwd = jax.jit(lambda xx, kk: md(xx, kk, training=False))
    out = jax.block_until_ready(fwd(x, kb))

    # Reference check with identical bases and matched (bf16-matmul) numerics.
    D = C // md.S
    x_dn = x.reshape(B * md.S, D, H * W)
    bases0 = _build_bases(kb, B, md.S, D, md.R)
    ref = jax.block_until_ready(
        jax.jit(_nmf2d_reference, static_argnums=(2,))(
            x_dn, bases0, md.eval_steps, float(md.inv_t))
    ).reshape(B, C, H, W)

    rel_err = float(jnp.linalg.norm(out - ref) / jnp.linalg.norm(ref))
    ok = (out.shape == (B, C, H, W)) and bool(jnp.isfinite(out).all()) and rel_err < 5e-2
    if ok:
        print("KERNEL_OK")
    else:
        raise SystemExit(f"mismatch: shape={out.shape} rel_err={rel_err}")
</pallas_src>

<mosaic_0001>
module attributes {stable_mosaic.version = 11 : i64} {
  func.func @_nmf2d_kernel(%arg0: i32, %arg1: memref<1x64x256xbf16, #tpu.memory_space<vmem>>, %arg2: memref<1x64x64xf32, #tpu.memory_space<vmem>>, %arg3: memref<1x64x256xf32, #tpu.memory_space<vmem>>) attributes {dimension_semantics = [#tpu.dimension_semantics<parallel>], iteration_bounds = array<i64: 2>, scalar_prefetch = 0 : i64, scratch_operands = 0 : i64, tpu.core_type = #tpu.core_type<tc>, window_params = [{transform_indices = @transform_0, window_bounds = array<i64: 1, 64, 256>}, {transform_indices = @transform_1, window_bounds = array<i64: 1, 64, 64>}, {transform_indices = @transform_2, window_bounds = array<i64: 1, 64, 256>}]} {
    %c0 = arith.constant 0 : index
    %c0_0 = arith.constant 0 : index
    %c0_1 = arith.constant 0 : index
    %0 = vector.load %arg1[%c0, %c0_0, %c0_1] : memref<1x64x256xbf16, #tpu.memory_space<vmem>>, vector<1x64x256xbf16>
    %1 = vector.shape_cast %0 : vector<1x64x256xbf16> to vector<64x256xbf16>
    %c0_2 = arith.constant 0 : index
    %c0_3 = arith.constant 0 : index
    %c0_4 = arith.constant 0 : index
    %2 = vector.load %arg2[%c0_2, %c0_3, %c0_4] : memref<1x64x64xf32, #tpu.memory_space<vmem>>, vector<1x64x64xf32>
    %3 = vector.shape_cast %2 : vector<1x64x64xf32> to vector<64x64xf32>
    %4 = arith.truncf %3 : vector<64x64xf32> to vector<64x64xbf16>
    %cst = arith.constant dense<0.000000e+00> : vector<64x256xf32>
    %5 = tpu.matmul %4, %1, %cst {dimension_numbers = #tpu.dot_dimension_numbers<[0], [0], [1], [1], [0, 1, 1, 1], [], []>} : vector<64x64xbf16>, vector<64x256xbf16>, vector<64x256xf32> -> vector<64x256xf32>
    %cst_5 = arith.constant 1.000000e+02 : f32
    %6 = vector.broadcast %cst_5 : f32 to vector<64x256xf32>
    %7 = arith.mulf %6, %5 : vector<64x256xf32>
    %cst_6 = arith.constant dense<0xFF800000> : vector<256xf32>
    %8 = vector.multi_reduction <maximumf>, %7, %cst_6 [0] : vector<64x256xf32> to vector<256xf32>
    %9 = vector.shape_cast %8 : vector<256xf32> to vector<1x256xf32>
    %10 = vector.broadcast %9 : vector<1x256xf32> to vector<64x256xf32>
    %11 = arith.subf %7, %10 : vector<64x256xf32>
    %12 = math.exp %11 : vector<64x256xf32>
    %cst_7 = arith.constant dense<0.000000e+00> : vector<256xf32>
    %13 = vector.multi_reduction <add>, %12, %cst_7 [0] : vector<64x256xf32> to vector<256xf32>
    %14 = vector.shape_cast %13 : vector<256xf32> to vector<1x256xf32>
    %15 = tpu.reciprocal %14 {approx = true} : vector<1x256xf32> -> vector<1x256xf32>
    %16 = vector.broadcast %15 : vector<1x256xf32> to vector<64x256xf32>
    %17 = arith.mulf %12, %16 : vector<64x256xf32>
    %18 = arith.truncf %3 : vector<64x64xf32> to vector<64x64xbf16>
    %19 = arith.truncf %3 : vector<64x64xf32> to vector<64x64xbf16>
    %cst_8 = arith.constant dense<0.000000e+00> : vector<64x64xf32>
    %20 = tpu.matmul %18, %19, %cst_8 {dimension_numbers = #tpu.dot_dimension_numbers<[0], [0], [1], [1], [0, 1, 1, 1], [], []>} : vector<64x64xbf16>, vector<64x64xbf16>, vector<64x64xf32> -> vector<64x64xf32>
    %21 = arith.truncf %20 : vector<64x64xf32> to vector<64x64xbf16>
    %22 = arith.truncf %17 : vector<64x256xf32> to vector<64x256xbf16>
    %cst_9 = arith.constant dense<0.000000e+00> : vector<64x256xf32>
    %23 = tpu.matmul %21, %22, %cst_9 {dimension_numbers = #tpu.dot_dimension_numbers<[1], [0], [0], [1], [0, 0, 1, 1], [], []>} : vector<64x64xbf16>, vector<64x256xbf16>, vector<64x256xf32> -> vector<64x256xf32>
    %24 = arith.mulf %17, %5 : vector<64x256xf32>
    %cst_10 = arith.constant 9.99999997E-7 : f32
    %25 = vector.broadcast %cst_10 : f32 to vector<64x256xf32>
    %26 = arith.addf %23, %25 : vector<64x256xf32>
    %27 = tpu.reciprocal %26 {approx = true} : vector<64x256xf32> -> vector<64x256xf32>
    %28 = arith.mulf %24, %27 : vector<64x256xf32>
    %29 = arith.truncf %28 : vector<64x256xf32> to vector<64x256xbf16>
    %cst_11 = arith.constant dense<0.000000e+00> : vector<64x64xf32>
    %30 = tpu.matmul %1, %29, %cst_11 {dimension_numbers = #tpu.dot_dimension_numbers<[1], [1], [0], [0], [0, 0, 1, 0], [], []>} : vector<64x256xbf16>, vector<64x256xbf16>, vector<64x64xf32> -> vector<64x64xf32>
    %31 = arith.truncf %28 : vector<64x256xf32> to vector<64x256xbf16>
    %32 = arith.truncf %28 : vector<64x256xf32> to vector<64x256xbf16>
    %cst_12 = arith.constant dense<0.000000e+00> : vector<64x64xf32>
    %33 = tpu.matmul %31, %32, %cst_12 {dimension_numbers = #tpu.dot_dimension_numbers<[1], [1], [0], [0], [0, 0, 1, 0], [], []>} : vector<64x256xbf16>, vector<64x256xbf16>, vector<64x64xf32> -> vector<64x64xf32>
    %34 = arith.truncf %3 : vector<64x64xf32> to vector<64x64xbf16>
    %35 = arith.truncf %33 : vector<64x64xf32> to vector<64x64xbf16>
    %cst_13 = arith.constant dense<0.000000e+00> : vector<64x64xf32>
    %36 = tpu.matmul %34, %35, %cst_13 {dimension_numbers = #tpu.dot_dimension_numbers<[1], [0], [0], [1], [0, 0, 1, 1], [], []>} : vector<64x64xbf16>, vector<64x64xbf16>, vector<64x64xf32> -> vector<64x64xf32>
    %37 = arith.mulf %3, %30 : vector<64x64xf32>
    %cst_14 = arith.constant 9.99999997E-7 : f32
    %38 = vector.broadcast %cst_14 : f32 to vector<64x64xf32>
    %39 = arith.addf %36, %38 : vector<64x64xf32>
    %40 = tpu.reciprocal %39 {approx = true} : vector<64x64xf32> -> vector<64x64xf32>
    %41 = arith.mulf %37, %40 : vector<64x64xf32>
    %c0_i32 = arith.constant 0 : i32
    %c6_i32 = arith.constant 6 : i32
    %42 = arith.addi %c0_i32, %c6_i32 : i32
    %c1_i32 = arith.constant 1 : i32
    %43:2 = scf.for %arg4 = %c0_i32 to %42 step %c1_i32 iter_args(%arg5 = %28, %arg6 = %41) -> (vector<64x256xf32>, vector<64x64xf32>)  : i32 {
      %63 = arith.truncf %arg6 : vector<64x64xf32> to vector<64x64xbf16>
      %cst_23 = arith.constant dense<0.000000e+00> : vector<64x256xf32>
      %64 = tpu.matmul %63, %1, %cst_23 {dimension_numbers = #tpu.dot_dimension_numbers<[0], [0], [1], [1], [0, 1, 1, 1], [], []>} : vector<64x64xbf16>, vector<64x256xbf16>, vector<64x256xf32> -> vector<64x256xf32>
      %65 = arith.truncf %arg6 : vector<64x64xf32> to vector<64x64xbf16>
      %66 = arith.truncf %arg6 : vector<64x64xf32> to vector<64x64xbf16>
      %cst_24 = arith.constant dense<0.000000e+00> : vector<64x64xf32>
      %67 = tpu.matmul %65, %66, %cst_24 {dimension_numbers = #tpu.dot_dimension_numbers<[0], [0], [1], [1], [0, 1, 1, 1], [], []>} : vector<64x64xbf16>, vector<64x64xbf16>, vector<64x64xf32> -> vector<64x64xf32>
      %68 = arith.truncf %67 : vector<64x64xf32> to vector<64x64xbf16>
      %69 = arith.truncf %arg5 : vector<64x256xf32> to vector<64x256xbf16>
      %cst_25 = arith.constant dense<0.000000e+00> : vector<64x256xf32>
      %70 = tpu.matmul %68, %69, %cst_25 {dimension_numbers = #tpu.dot_dimension_numbers<[1], [0], [0], [1], [0, 0, 1, 1], [], []>} : vector<64x64xbf16>, vector<64x256xbf16>, vector<64x256xf32> -> vector<64x256xf32>
      %71 = arith.mulf %arg5, %64 : vector<64x256xf32>
      %cst_26 = arith.constant 9.99999997E-7 : f32
      %72 = vector.broadcast %cst_26 : f32 to vector<64x256xf32>
      %73 = arith.addf %70, %72 : vector<64x256xf32>
      %74 = tpu.reciprocal %73 {approx = true} : vector<64x256xf32> -> vector<64x256xf32>
      %75 = arith.mulf %71, %74 : vector<64x256xf32>
      %76 = arith.truncf %75 : vector<64x256xf32> to vector<64x256xbf16>
      %cst_27 = arith.constant dense<0.000000e+00> : vector<64x64xf32>
      %77 = tpu.matmul %1, %76, %cst_27 {dimension_numbers = #tpu.dot_dimension_numbers<[1], [1], [0], [0], [0, 0, 1, 0], [], []>} : vector<64x256xbf16>, vector<64x256xbf16>, vector<64x64xf32> -> vector<64x64xf32>
      %78 = arith.truncf %75 : vector<64x256xf32> to vector<64x256xbf16>
      %79 = arith.truncf %75 : vector<64x256xf32> to vector<64x256xbf16>
      %cst_28 = arith.constant dense<0.000000e+00> : vector<64x64xf32>
      %80 = tpu.matmul %78, %79, %cst_28 {dimension_numbers = #tpu.dot_dimension_numbers<[1], [1], [0], [0], [0, 0, 1, 0], [], []>} : vector<64x256xbf16>, vector<64x256xbf16>, vector<64x64xf32> -> vector<64x64xf32>
      %81 = arith.truncf %arg6 : vector<64x64xf32> to vector<64x64xbf16>
      %82 = arith.truncf %80 : vector<64x64xf32> to vector<64x64xbf16>
      %cst_29 = arith.constant dense<0.000000e+00> : vector<64x64xf32>
      %83 = tpu.matmul %81, %82, %cst_29 {dimension_numbers = #tpu.dot_dimension_numbers<[1], [0], [0], [1], [0, 0, 1, 1], [], []>} : vector<64x64xbf16>, vector<64x64xbf16>, vector<64x64xf32> -> vector<64x64xf32>
      %84 = arith.mulf %arg6, %77 : vector<64x64xf32>
      %cst_30 = arith.constant 9.99999997E-7 : f32
      %85 = vector.broadcast %cst_30 : f32 to vector<64x64xf32>
      %86 = arith.addf %83, %85 : vector<64x64xf32>
      %87 = tpu.reciprocal %86 {approx = true} : vector<64x64xf32> -> vector<64x64xf32>
      %88 = arith.mulf %84, %87 : vector<64x64xf32>
      scf.yield %75, %88 : vector<64x256xf32>, vector<64x64xf32>
    }
    %44 = arith.truncf %43#1 : vector<64x64xf32> to vector<64x64xbf16>
    %cst_15 = arith.constant dense<0.000000e+00> : vector<64x256xf32>
    %45 = tpu.matmul %44, %1, %cst_15 {dimension_numbers = #tpu.dot_dimension_numbers<[0], [0], [1], [1], [0, 1, 1, 1], [], []>} : vector<64x64xbf16>, vector<64x256xbf16>, vector<64x256xf32> -> vector<64x256xf32>
    %46 = arith.truncf %43#1 : vector<64x64xf32> to vector<64x64xbf16>
    %47 = arith.truncf %43#1 : vector<64x64xf32> to vector<64x64xbf16>
    %cst_16 = arith.constant dense<0.000000e+00> : vector<64x64xf32>
    %48 = tpu.matmul %46, %47, %cst_16 {dimension_numbers = #tpu.dot_dimension_numbers<[0], [0], [1], [1], [0, 1, 1, 1], [], []>} : vector<64x64xbf16>, vector<64x64xbf16>, vector<64x64xf32> -> vector<64x64xf32>
    %49 = arith.truncf %48 : vector<64x64xf32> to vector<64x64xbf16>
    %50 = arith.truncf %43#0 : vector<64x256xf32> to vector<64x256xbf16>
    %cst_17 = arith.constant dense<0.000000e+00> : vector<64x256xf32>
    %51 = tpu.matmul %49, %50, %cst_17 {dimension_numbers = #tpu.dot_dimension_numbers<[1], [0], [0], [1], [0, 0, 1, 1], [], []>} : vector<64x64xbf16>, vector<64x256xbf16>, vector<64x256xf32> -> vector<64x256xf32>
    %52 = arith.mulf %43#0, %45 : vector<64x256xf32>
    %cst_18 = arith.constant 9.99999997E-7 : f32
    %53 = vector.broadcast %cst_18 : f32 to vector<64x256xf32>
    %54 = arith.addf %51, %53 : vector<64x256xf32>
    %55 = tpu.reciprocal %54 {approx = true} : vector<64x256xf32> -> vector<64x256xf32>
    %56 = arith.mulf %52, %55 : vector<64x256xf32>
    %57 = arith.truncf %43#1 : vector<64x64xf32> to vector<64x64xbf16>
    %58 = arith.truncf %56 : vector<64x256xf32> to vector<64x256xbf16>
    %cst_19 = arith.constant dense<0.000000e+00> : vector<64x256xf32>
    %59 = tpu.matmul %57, %58, %cst_19 {dimension_numbers = #tpu.dot_dimension_numbers<[1], [0], [0], [1], [0, 0, 1, 1], [], []>} : vector<64x64xbf16>, vector<64x256xbf16>, vector<64x256xf32> -> vector<64x256xf32>
    %c0_20 = arith.constant 0 : index
    %c0_21 = arith.constant 0 : index
    %c0_22 = arith.constant 0 : index
    %60 = vector.load %arg3[%c0_20, %c0_21, %c0_22] : memref<1x64x256xf32, #tpu.memory_space<vmem>>, vector<1x64x256xf32>
    %61 = vector.shape_cast %60 : vector<1x64x256xf32> to vector<64x256xf32>
    %62 = vector.shape_cast %59 : vector<64x256xf32> to vector<1x64x256xf32>
    tpu.vector_store %arg3[%c0_20, %c0_21, %c0_22], %62 {strides = array<i32>} : memref<1x64x256xf32, #tpu.memory_space<vmem>>, vector<1x64x256xf32>,
    return
  }
  func.func @transform_0(%arg0: i32) -> (i32, i32, i32) {
    %c0_i32 = arith.constant 0 : i32
    %c0_i32_0 = arith.constant 0 : i32
    %c0_i32_1 = arith.constant 0 : i32
    return %arg0, %c0_i32, %c0_i32_0 : i32, i32, i32
  }
  func.func @transform_1(%arg0: i32) -> (i32, i32, i32) {
    %c0_i32 = arith.constant 0 : i32
    %c0_i32_0 = arith.constant 0 : i32
    %c0_i32_1 = arith.constant 0 : i32
    return %arg0, %c0_i32, %c0_i32_0 : i32, i32, i32
  }
  func.func @transform_2(%arg0: i32) -> (i32, i32, i32) {
    %c0_i32 = arith.constant 0 : i32
    %c0_i32_0 = arith.constant 0 : i32
    %c0_i32_1 = arith.constant 0 : i32
    return %arg0, %c0_i32, %c0_i32_0 : i32, i32, i32
  }
}

</mosaic_0001>

<bundles_post_ra>
// kernel: _lambda_.1
= control target key start
LH: loop header
LB: loop body
LE: loop exit
PB: predicated region body
PF: predicated region fallthrough
CT: control target
= control target key end

     0   :  { %s2881_s9 = smov 0   ;;  %s3880_s0 = inlined_call_operand.vmem [shape: bf16[2,64,256], index: 0, kind: input, shape index: {}]   ;;  %s3881_s1 = inlined_call_operand.vmem [shape: f32[2,64,64], index: 1, kind: input, shape index: {}]   ;;  %s3882_s2 = inlined_call_operand.vmem [shape: f32[2,64,256], index: 2, kind: output, shape index: {}]  }
   0x1 LB: > { %s2070_s10 = sadd.s32 4294967295, %s2762_s9   ;;  %p2074_p0 = scmp.ge.s32.totalorder %s2762_s9, 1  ;;  %s2762_s9 = sphi %s2881_s9, %s12_s9  }
   0x2   : > { %p122_p1 = scmp.lt.s32.totalorder %s2762_s9, 3 }
   0x4   : > { %p123_p2 = pnand %p2074_p0, %p122_p1 }
   0x6   : > { %126 = sbr.rel (%p123_p2) target bundleno = 3090 (0xc12), region = 28 }
   0xd   : > { %p149_p3 = scmp.lt.s32.totalorder %s2070_s10, 1  ;;  %v3883_v0 = vmov 0   ;;  %vm241_vm0 = vcmask 523264   ;;  %s3337_s22 = smov 0  }
   0xe   : > { %286 = vmatprep.mubr.bf16.mxu0 %v3883_v0 }
   0xf   : > { %s4019_s10 = smov (!%p149_p3, %s2070_s10), 1 }
  0x10   : > { %s2139_s11 = sshll.u32 %s4019_s10, 6  ;;  %s2141_s12 = sshll.u32 %s4019_s10, 7 }
  0x11   : > { %s158_s15 = scalar_lea.vmem %s3881_s1, %s2139_s11  ;;  %s2896_s18 = scalar_lea.vmem %s3882_s2, %s2141_s12 }
  0x12   : > { %v2898_v1 = vld [vmem:[%s158_s15] sm:$0xff]  ;;  %v2900_v2 = vld [vmem:[%s158_s15 + $0x8] sm:$0xff]  ;;  %v2902_v3 = vld [vmem:[%s158_s15 + $0x10] sm:$0xff]  ;;  %s2907_s21 = scalar_lea.vmem %s3880_s0, %s2139_s11 }
  0x13   : > { %3913 = vst [vmem:[#allocation2_spill] sm:$0xff] %v2898_v1  ;;  %3914 = vst [vmem:[#allocation3_spill] sm:$0xff] %v2900_v2  ;;  %v2911_v4 = vpack.c.bf16 %v2900_v2, %v2898_v1  ;;  %v2913_v5 = vld [vmem:[%s158_s15 + $0x18] sm:$0xff]  ;;  %v2915_v6 = vld [vmem:[%s158_s15 + $0x20] sm:$0xff] }
  0x14   : > { %3915 = vst [vmem:[#allocation4_spill] sm:$0xff] %v2902_v3  ;;  %3917 = vst [vmem:[#allocation6_spill] sm:$0xff] %v2913_v5  ;;  %v2917_v7 = vld [vmem:[%s158_s15 + $0x28] sm:$0xff]  ;;  %v2922_v8 = vpack.c.bf16 %v2913_v5, %v2902_v3  ;;  %v2932_v11 = vld [vmem:[%s2907_s21 + $0x14] ss:$8 sps:$4 sm:$0xff]  }
  0x15   : > { %3916 = vst [vmem:[#allocation5_spill] sm:$0xff] %v2911_v4  ;;  %3918 = vst [vmem:[#allocation7_spill] sm:$0xff] %v2915_v6  ;;  %185 = vxpose.xlu0.c.b16.start [1/4] (short) (narrow) %v2911_v4, 64  ;;  %v2925_v9 = vld [vmem:[%s2907_s21 + $0x4] ss:$8 sps:$4 sm:$0xff]   ;;  %2182 = vmatprep.subr.bf16.mxu1 %v2911_v4  ;;  %v2944_v13 = vpack.c.bf16 %v2917_v7, %v2915_v6  ;;  %v2950_v15 = vld [vmem:[%s158_s15 + $0x30] sm:$0xff] }
  0x16   : > { %3919 = vst [vmem:[#allocation8_spill] sm:$0xff] %v2917_v7  ;;  %3920 = vst [vmem:[#allocation9_spill] sm:$0xff] %v2922_v8  ;;  %v2928_v10 = vld [vmem:[%s2907_s21] ss:$8 sps:$4 sm:$0xff]   ;;  %2183 = vmatpush3.bf16.msra.mxu1 %v2911_v4  ;;  %254 = vmatprep.subr.bf16.mxu0 %v2925_v9  ;;  %v2939_v12 = vld [vmem:[%s2907_s21 + $0x10] ss:$8 sps:$4 sm:$0xff]  }
  0x17   : > { %3921 = vst [vmem:[#allocation10_spill] sm:$0xff] %v2925_v9  ;;  %2184 = vmatprep.subr.bf16.mxu1 %v2922_v8  ;;  %255 = vmatpush1.bf16.msra.mxu0 %v2928_v10  ;;  %3922 = vst [vmem:[#allocation11_spill] sm:$0xff] %v2939_v12  ;;  %v2948_v14 = vld [vmem:[%s2907_s21 + $0x24] ss:$8 sps:$4 sm:$0xff]   ;;  %v2952_v16 = vld [vmem:[%s158_s15 + $0x38] sm:$0xff] }
  0x18   : > { %3923 = vst [vmem:[#allocation12_spill] sm:$0xff] %v2944_v13  ;;  %256 = vmatprep.subr.bf16.mxu0 %v2932_v11  ;;  %3924 = vst [vmem:[#allocation13_spill] sm:$0xff] %v2948_v14  ;;  %v2958_v17 = vld [vmem:[%s2907_s21 + $0x20] ss:$8 sps:$4 sm:$0xff]   ;;  %v2963_v18 = vpack.c.bf16 %v2952_v16, %v2950_v15  ;;  %v2967_v19 = vld [vmem:[%s2907_s21 + $0x34] ss:$8 sps:$4 sm:$0xff]  }
  0x19   : > { %186 = vxpose.xlu0.c.b16.cont [2/4] (short) (narrow) %v2922_v8, 64  ;;  %3925 = vst [vmem:[#allocation14_spill] sm:$0xff] %v2950_v15  ;;  %3926 = vst [vmem:[#allocation15_spill] sm:$0xff] %v2952_v16  ;;  %v2973_v20 = vld [vmem:[%s2907_s21 + $0x30] ss:$8 sps:$4 sm:$0xff]  }
  0x1a   : > { %2185 = vmatpush3.bf16.msra.mxu1 %v2922_v8  ;;  %3927 = vst [vmem:[#allocation16_spill] sm:$0xff] %v2958_v17  ;;  %3928 = vst [vmem:[#allocation17_spill] sm:$0xff] %v2963_v18 }
  0x1b   : > { %2186 = vmatprep.subr.bf16.mxu1 %v2944_v13  ;;  %257 = vmatpush1.bf16.msra.mxu0 %v2939_v12  ;;  %3929 = vst [vmem:[#allocation18_spill] sm:$0xff] %v2967_v19  ;;  %3930 = vst [vmem:[#allocation19_spill] sm:$0xff] %v2973_v20 }
  0x1c   : > { %258 = vmatprep.subr.bf16.mxu0 %v2948_v14 }
  0x1d   : > { %187 = vxpose.xlu0.c.b16.cont [3/4] (short) (narrow) %v2944_v13, 64 }
  0x1e   : > { %2187 = vmatpush3.bf16.msra.mxu1 %v2944_v13 }
  0x1f   : > { %2188 = vmatprep.subr.bf16.mxu1 %v2963_v18  ;;  %259 = vmatpush1.bf16.msra.mxu0 %v2958_v17 }
  0x20   : > { %260 = vmatprep.subr.bf16.mxu0 %v2967_v19 }
  0x21   : > { %188 = vxpose.xlu0.c.b16.end [4/4] (short) (narrow) %v2963_v18, 64 }
  0x22   : > { %2189 = vmatpush3.bf16.msra.mxu1 %v2963_v18 }
  0x23   : > { %261 = vmatpush1.bf16.msra.mxu0 %v2973_v20 }
  0x7b   : > { %v193_v21 = vpop.trf.xlu0 }
  0x7c   : > { %2089 = vmatmul.mubr.msk.bf16.vlgmr.msra.gmra.mrb[0].mxu0 %vm241_vm0, %v193_v21  ;;  %2190 = vmatprep.mubr.msk.bf16.mxu1 %vm241_vm0, %v193_v21 }
  0x7d   : > { %296 = vmatprep.mubr.bf16.mxu0 %v3883_v0 }
  0x7f   : > { %v194_v22 = vpop.trf.xlu0 }
  0x80   : > { %2191 = vmatmul.mubr.msk.bf16.vlgmr.msra.gmra.mrb[0].mxu1 %vm241_vm0, %v194_v22 }
  0x83   : > { %v195_v23 = vpop.trf.xlu0 }
  0x84   : > { %2090 = vmatmul.mubr.msk.bf16.gmra.mrb[4].mxu0 %vm241_vm0, %v194_v22  ;;  %2194 = vmatprep.mubr.msk.bf16.mxu1 %vm241_vm0, %v195_v23 }
  0x85   : > { %306 = vmatprep.mubr.bf16.mxu0 %v3883_v0 }
  0x87   : > { %v196_v24 = vpop.trf.xlu0 }
  0x88   : > { %2195 = vmatmul.mubr.msk.bf16.gmra.mrb[4].mxu1 %vm241_vm0, %v196_v24 }
  0x89   : > { %598 = vmatprep.mubr.bf16.mxu1 %v3883_v0 }
  0x8c   : > { %2091 = vmatmul.mubr.msk.bf16.gmra.mrb[8].mxu0 %vm241_vm0, %v195_v23 }
  0x8d   : > { %316 = vmatprep.mubr.bf16.mxu0 %v3883_v0 }
  0x94   : > { %2092 = vmatmul.mubr.msk.bf16.gmra.mrb[12].mxu0 %vm241_vm0, %v196_v24 }
  0x95   : > { %711 = vmatprep.mubr.bf16.mxu0 %v2925_v9 }
 0x14f   : > { %v2992_v25 = vpop.f32.mrb[0].mxu0 }
 0x150   : > { %v2994_v26 = vpop.f32.mrb[1].mxu0  ;;  %v3015_v36 = vmul.f32 100.0, %v2992_v25 }
 0x151   : > { %v2996_v27 = vpop.f32.mrb[2].mxu0  ;;  %v3023_v39 = vmul.f32 100.0, %v2994_v26 }
 0x152   : > { %v2998_v28 = vpop.f32.mrb[3].mxu0  ;;  %v329_v42 = vmul.f32 100.0, %v2996_v27 }
 0x153   : > { %v3000_v29 = vpop.f32.mrb[0].mxu1  ;;  %v3039_v46 = vmul.f32 100.0, %v2998_v28 }
 0x154   : > { %v3002_v30 = vpop.f32.mrb[1].mxu1 }
 0x155   : > { %v3004_v31 = vpop.f32.mrb[2].mxu1 }
 0x156   : > { %v3008_v33 = vpop.f32.mrb[3].mxu1 }
 0x157   : > { %v3010_v34 = vpop.f32.mrb[4].mxu0 }
 0x158   : > { %v3018_v37 = vmul.f32 100.0, %v3010_v34  ;;  %v3020_v38 = vpop.f32.mrb[5].mxu0 }
 0x159   : > { %v3026_v40 = vmul.f32 100.0, %v3020_v38  ;;  %v3028_v41 = vpop.f32.mrb[6].mxu0 }
 0x15a   : > { %v343_v43 = vmax.f32 %v3015_v36, %v3018_v37  ;;  %v3034_v44 = vmul.f32 100.0, %v3028_v41  ;;  %v3036_v45 = vpop.f32.mrb[7].mxu0 }
 0x15b   : > { %v356_v47 = vmax.f32 %v3023_v39, %v3026_v40  ;;  %v3044_v48 = vmul.f32 100.0, %v3036_v45  ;;  %v3046_v49 = vpop.f32.mrb[4].mxu1 }
 0x15c   : > { %v344_v50 = vmax.f32 %v329_v42, %v3034_v44  ;;  %v3049_v51 = vpop.f32.mrb[5].mxu1 }
 0x15d   : > { %v357_v52 = vmax.f32 %v3039_v46, %v3044_v48  ;;  %v3053_v53 = vpop.f32.mrb[6].mxu1 }
 0x15e   : > { %v3057_v55 = vpop.f32.mrb[7].mxu1 }
 0x15f   : > { %v3059_v56 = vpop.f32.mrb[8].mxu0 }
 0x160   : > { %v335_v58 = vmul.f32 100.0, %v3059_v56  ;;  %v3064_v59 = vpop.f32.mrb[9].mxu0 }
 0x161   : > { %v3067_v60 = vmul.f32 100.0, %v3064_v59  ;;  %v3069_v61 = vpop.f32.mrb[10].mxu0 }
 0x162   : > { %v345_v62 = vmax.f32 %v343_v43, %v335_v58  ;;  %v337_v63 = vmul.f32 100.0, %v3069_v61  ;;  %v3072_v21 = vpop.f32.mrb[11].mxu0 }
 0x163   : > { %v358_v22 = vmax.f32 %v356_v47, %v3067_v60  ;;  %v3076_v23 = vmul.f32 100.0, %v3072_v21 }
 0x164   : > { %v346_v24 = vmax.f32 %v344_v50, %v337_v63 }
 0x165   : > { %v359_v54 = vmax.f32 %v357_v52, %v3076_v23 }
 0x167   : > { %v3079_v57 = vpop.f32.mrb[12].mxu0 }
 0x168   : > { %v339_v32 = vmul.f32 100.0, %v3079_v57  ;;  %v3082_v0 = vpop.f32.mrb[13].mxu0 }
 0x169   : > { %v3085_v43 = vmul.f32 100.0, %v3082_v0  ;;  %v3087_v35 = vpop.f32.mrb[14].mxu0 }
 0x16a   : > { %v347_v9 = vmax.f32 %v345_v62, %v339_v32  ;;  %v341_v47 = vmul.f32 100.0, %v3087_v35  ;;  %v3090_v7 = vpop.f32.mrb[15].mxu0 }
 0x16b   : > { %v360_v50 = vmax.f32 %v358_v22, %v3085_v43  ;;  %v3094_v52 = vmul.f32 100.0, %v3090_v7 }
 0x16c   : > { %v348_v16 = vmax.f32 %v346_v24, %v341_v47 }
 0x16d   : > { %v361_v6 = vmax.f32 %v359_v54, %v3094_v52 }
 0x16e   : > { %v349_v15 = vmax.f32 %v347_v9, %v348_v16 }
 0x16f   : > { %v362_v2 = vmax.f32 %v360_v50, %v361_v6 }
 0x170   : > { %v350_v5 = vrot.slane %v349_v15, 4 }
 0x171   : > { %v363_v1 = vrot.slane %v362_v2, 4 }
 0x172   : > { %v351_v3 = vmax.f32 %v349_v15, %v350_v5 }
 0x173   : > { %v364_v18 = vmax.f32 %v362_v2, %v363_v1 }
 0x174   : > { %v352_v13 = vrot.slane %v351_v3, 2 }
 0x175   : > { %v365_v62 = vrot.slane %v364_v18, 2 }
 0x176   : > { %v353_v8 = vmax.f32 %v351_v3, %v352_v13 }
 0x177   : > { %v366_v4 = vmax.f32 %v364_v18, %v365_v62 }
 0x178   : > { %v354_v20 = vrot.slane %v353_v8, 1 }
 0x179   : > { %v367_v19 = vrot.slane %v366_v4, 1 }
 0x17a   : > { %v355_v17 = vmax.f32 %v353_v8, %v354_v20 }
 0x17b   : > { %v368_v22 = vmax.f32 %v366_v4, %v367_v19 }
 0x17c   : > { %v369_v14 = vsub.f32 %v3015_v36, %v355_v17  ;;  %v371_v12 = vsub.f32 %v329_v42, %v355_v17  ;;  %v373_v24 = vsub.f32 %v3018_v37, %v355_v17  ;;  %v375_v9 = vsub.f32 %v3034_v44, %v355_v17 }
 0x17d   : > { %v377_v6 = vsub.f32 %v335_v58, %v355_v17  ;;  %v379_v16 = vsub.f32 %v337_v63, %v355_v17  ;;  %v381_v54 = vsub.f32 %v339_v32, %v355_v17  ;;  %v383_v5 = vsub.f32 %v341_v47, %v355_v17 }
 0x17e   : > { %v385_v1 = vmul.f32 1.442695, %v369_v14  ;;  %v389_v2 = vmul.f32 1.442695, %v371_v12  ;;  %v370_v3 = vsub.f32 %v3023_v39, %v368_v22  ;;  %v393_v13 = vmul.f32 1.442695, %v373_v24 }
 0x17f   : > { %v372_v15 = vsub.f32 %v3039_v46, %v368_v22  ;;  %v397_v4 = vmul.f32 1.442695, %v375_v9  ;;  %v374_v8 = vsub.f32 %v3026_v40, %v368_v22  ;;  %v376_v18 = vsub.f32 %v3044_v48, %v368_v22 }
 0x180   : > { %2492 = vpow2.f32 %v385_v1  ;;  %v378_v19 = vsub.f32 %v3067_v60, %v368_v22  ;;  %v380_v20 = vsub.f32 %v3076_v23, %v368_v22  ;;  %v401_v32 = vmul.f32 1.442695, %v377_v6 }
 0x181   : > { %2494 = vpow2.f32 %v389_v2  ;;  %v382_v14 = vsub.f32 %v3085_v43, %v368_v22  ;;  %v384_v12 = vsub.f32 %v3094_v52, %v368_v22  ;;  %v405_v17 = vmul.f32 1.442695, %v379_v16 }
 0x182   : > { %2496 = vpow2.f32 %v393_v13  ;;  %v387_v36 = vmul.f32 1.442695, %v370_v3  ;;  %v391_v37 = vmul.f32 1.442695, %v372_v15  ;;  %v409_v39 = vmul.f32 1.442695, %v381_v54 }
 0x183   : > { %2498 = vpow2.f32 %v397_v4  ;;  %v395_v40 = vmul.f32 1.442695, %v374_v8  ;;  %v413_v42 = vmul.f32 1.442695, %v383_v5  ;;  %v399_v44 = vmul.f32 1.442695, %v376_v18 }
 0x184   : > { %2500 = vpow2.f32 %v401_v32  ;;  %v403_v58 = vmul.f32 1.442695, %v378_v19  ;;  %v407_v23 = vmul.f32 1.442695, %v380_v20  ;;  %v411_v50 = vmul.f32 1.442695, %v382_v14 }
 0x185   : > { %2502 = vpow2.f32 %v405_v17  ;;  %v415_v24 = vmul.f32 1.442695, %v384_v12 }
 0x186   : > { %2504 = vpow2.f32 %v387_v36 }
 0x187   : > { %2506 = vpow2.f32 %v391_v37 }
 0x188   : > { %2508 = vpow2.f32 %v409_v39 }
 0x189   : > { %2510 = vpow2.f32 %v395_v40 }
 0x18a   : > { %v2493_v46 = vpop.eup %2492  ;;  %2512 = vpow2.f32 %v413_v42 }
 0x18b   : > { %v2495_v48 = vpop.eup %2494  ;;  %2514 = vpow2.f32 %v399_v44 }
 0x18c   : > { %v417_v60 = vadd.f32 %v2495_v48, %v2493_v46  ;;  %v2497_v63 = vpop.eup %2496  ;;  %2516 = vpow2.f32 %v403_v58 }
 0x18d   : > { %v2499_v47 = vpop.eup %2498  ;;  %2518 = vpow2.f32 %v407_v23 }
 0x18e   : > { %v418_v43 = vadd.f32 %v2497_v63, %v417_v60  ;;  %v2501_v52 = vpop.eup %2500  ;;  %2520 = vpow2.f32 %v411_v50 }
 0x18f   : > { %v2503_v22 = vpop.eup %2502  ;;  %2522 = vpow2.f32 %v415_v24 }
 0x190   : > { %v419_v62 = vadd.f32 %v2499_v47, %v418_v43  ;;  %v2505_v9 = vpop.eup %2504 }
 0x191   : > { %v2507_v16 = vpop.eup %2506 }
 0x192   : > { %v420_v6 = vadd.f32 %v2501_v52, %v419_v62  ;;  %v2509_v54 = vpop.eup %2508  ;;  %v430_v1 = vadd.f32 %v2507_v16, %v2505_v9 }
 0x193   : > { %v2511_v2 = vpop.eup %2510 }
 0x194   : > { %v421_v5 = vadd.f32 %v2503_v22, %v420_v6  ;;  %v2513_v3 = vpop.eup %2512  ;;  %v431_v15 = vadd.f32 %v2511_v2, %v430_v1 }
 0x195   : > { %v2515_v4 = vpop.eup %2514 }
 0x196   : > { %v422_v13 = vadd.f32 %v2509_v54, %v421_v5  ;;  %v432_v18 = vadd.f32 %v2515_v4, %v431_v15  ;;  %v2517_v19 = vpop.eup %2516 }
 0x197   : > { %v2519_v14 = vpop.eup %2518 }
 0x198   : > { %v423_v8 = vadd.f32 %v2513_v3, %v422_v13  ;;  %v433_v32 = vadd.f32 %v2517_v19, %v432_v18  ;;  %v2521_v36 = vpop.eup %2520 }
 0x199   : > { %v2523_v40 = vpop.eup %2522 }
 0x19a   : > { %v424_v20 = vrot.slane %v423_v8, 4  ;;  %v434_v17 = vadd.f32 %v2519_v14, %v433_v32 }
 0x19c   : > { %v425_v12 = vadd.f32 %v424_v20, %v423_v8  ;;  %v435_v39 = vadd.f32 %v2521_v36, %v434_v17 }
 0x19e   : > { %v426_v37 = vrot.slane %v425_v12, 2  ;;  %v436_v44 = vadd.f32 %v2523_v40, %v435_v39 }
 0x1a0   : > { %v427_v42 = vadd.f32 %v426_v37, %v425_v12  ;;  %v437_v60 = vrot.slane %v436_v44, 4 }
 0x1a2   : > { %v428_v58 = vrot.slane %v427_v42, 1  ;;  %v438_v43 = vadd.f32 %v437_v60, %v436_v44 }
 0x1a4   : > { %v429_v23 = vadd.f32 %v428_v58, %v427_v42  ;;  %v439_v50 = vrot.slane %v438_v43, 2 }
 0x1a6   : > { %2524 = vrcp.f32 %v429_v23  ;;  %v440_v62 = vadd.f32 %v439_v50, %v438_v43 }
 0x1a8   : > { %v441_v24 = vrot.slane %v440_v62, 1 }
 0x1aa   : > { %v442_v6 = vadd.f32 %v441_v24, %v440_v62 }
 0x1ac   : > { %2526 = vrcp.f32 %v442_v6 }
 0x1b0   : > { %v2525_v5 = vpop.eup %2524 }
 0x1b1   : > { %v457_v1 = vmul.f32 %v2525_v5, %v2509_v54  ;;  %v459_v13 = vmul.f32 %v2525_v5, %v2513_v3  ;;  %v445_v15 = vmul.f32 %v2525_v5, %v2493_v46  ;;  %v447_v8 = vmul.f32 %v2525_v5, %v2495_v48 }
 0x1b2   : > { %v449_v18 = vmul.f32 %v2525_v5, %v2497_v63  ;;  %v451_v20 = vmul.f32 %v2525_v5, %v2499_v47  ;;  %v453_v32 = vmul.f32 %v2525_v5, %v2501_v52  ;;  %v455_v12 = vmul.f32 %v2525_v5, %v2503_v22 }
 0x1b3   : > { %v536_v17 = vpack.c.bf16 %v459_v13, %v457_v1  ;;  %v3109_v37 = vmul.f32 %v457_v1, %v3079_v57  ;;  %v3112_v39 = vmul.f32 %v459_v13, %v3087_v35  ;;  %v530_v42 = vpack.c.bf16 %v447_v8, %v445_v15 }
 0x1b4   : > { %v532_v44 = vpack.c.bf16 %v451_v20, %v449_v18  ;;  %v534_v58 = vpack.c.bf16 %v455_v12, %v453_v32  ;;  %v3115_v60 = vmul.f32 %v445_v15, %v2992_v25  ;;  %v3118_v46 = vmul.f32 %v447_v8, %v2996_v27 }
 0x1b5   : > { %v3121_v48 = vmul.f32 %v449_v18, %v3010_v34  ;;  %v3124_v63 = vmul.f32 %v451_v20, %v3028_v41  ;;  %v3127_v57 = vmul.f32 %v453_v32, %v3059_v56  ;;  %v3130_v35 = vmul.f32 %v455_v12, %v3069_v61 }
 0x1b6   : > { %v2527_v47 = vpop.eup %2526 }
 0x1b7   : > { %v460_v52 = vmul.f32 %v2527_v47, %v2523_v40  ;;  %v446_v22 = vmul.f32 %v2527_v47, %v2505_v9  ;;  %v448_v25 = vmul.f32 %v2527_v47, %v2507_v16  ;;  %v450_v54 = vmul.f32 %v2527_v47, %v2511_v2 }
 0x1b8   : > { %v452_v3 = vmul.f32 %v2527_v47, %v2515_v4  ;;  %v454_v27 = vmul.f32 %v2527_v47, %v2517_v19  ;;  %v456_v23 = vmul.f32 %v2527_v47, %v2519_v14  ;;  %v458_v43 = vmul.f32 %v2527_v47, %v2521_v36 }
 0x1b9   : > { %v3133_v34 = vmul.f32 %v460_v52, %v3090_v7  ;;  %v531_v41 = vpack.c.bf16 %v448_v25, %v446_v22  ;;  %v539_v50 = vmul.f32 %v446_v22, %v2994_v26  ;;  %v541_v56 = vmul.f32 %v448_v25, %v2998_v28 }
 0x1ba   : > { %v533_v62 = vpack.c.bf16 %v452_v3, %v450_v54  ;;  %v535_v61 = vpack.c.bf16 %v456_v23, %v454_v27  ;;  %v537_v24 = vpack.c.bf16 %v460_v52, %v458_v43  ;;  %v3138_v40 = vmul.f32 %v450_v54, %v3020_v38 }
 0x1bb   : > { %566 = vmatprep.subr.bf16.mxu1 %v531_v41  ;;  %v3141_v9 = vmul.f32 %v452_v3, %v3036_v45  ;;  %v3144_v16 = vmul.f32 %v454_v27, %v3064_v59  ;;  %v3147_v7 = vmul.f32 %v456_v23, %v3072_v21  ;;  %v3150_v26 = vmul.f32 %v458_v43, %v3082_v0 }
 0x1bc   : > { %567 = vmatpush1.bf16.msra.mxu1 %v530_v42  ;;  %v3931_v28 = vpack.c.bf16 %v3008_v33, %v3002_v30  ;;  %v3932_v38 = vmov 0   ;;  %v3933_v45 = vpack.c.bf16 %v3004_v31, %v3000_v29  ;;  %v3934_v0 = vpack.c.bf16 %v3057_v55, %v3049_v51 }
 0x1bd   : > { %568 = vmatprep.subr.bf16.mxu1 %v533_v62  ;;  %v3935_v30 = vpack.c.bf16 %v3053_v53, %v3046_v49 }
 0x1c0   : > { %569 = vmatpush1.bf16.msra.mxu1 %v532_v44 }
 0x1c1   : > { %570 = vmatprep.subr.bf16.mxu1 %v535_v61 }
 0x1c4   : > { %571 = vmatpush1.bf16.msra.mxu1 %v534_v58 }
 0x1c5   : > { %572 = vmatprep.subr.bf16.mxu1 %v537_v24 }
 0x1c8   : > { %573 = vmatpush1.bf16.msra.mxu1 %v536_v17 }
 0x1cb   : > { %2097 = vmatmul.mubr.msk.bf16.vlgmr.msra.gmra.mrb[8].mxu1 %vm241_vm0, %v3931_v28 }
 0x1cc   : > { %608 = vmatprep.mubr.bf16.mxu1 %v3932_v38 }
 0x1d3   : > { %2098 = vmatmul.mubr.msk.bf16.gmra.mrb[12].mxu1 %vm241_vm0, %v3933_v45 }
 0x1d4   : > { %618 = vmatprep.mubr.bf16.mxu1 %v3932_v38 }
 0x1db   : > { %2099 = vmatmul.mubr.msk.bf16.gmra.mrb[16].mxu1 %vm241_vm0, %v3934_v0 }
 0x1dc   : > { %628 = vmatprep.mubr.bf16.mxu1 %v3932_v38 }
 0x1e3   : > { %2100 = vmatmul.mubr.msk.bf16.gmra.mrb[20].mxu1 %vm241_vm0, %v3935_v30 }
 0x29e   : > { %v600_v33 = vpop.f32.mrb[8].mxu1 }
 0x29f   : > { %v601_v59 = vadd.f32 1e-06, %v600_v33  ;;  %v602_v21 = vpop.f32.mrb[9].mxu1 }
 0x2a0   : > { %v603_v29 = vadd.f32 1e-06, %v602_v21  ;;  %v604_v31 = vpop.f32.mrb[10].mxu1 }
 0x2a1   : > { %2528 = vrcp.f32 %v601_v59  ;;  %v605_v2 = vadd.f32 1e-06, %v604_v31  ;;  %v606_v4 = vpop.f32.mrb[11].mxu1 }
 0x2a2   : > { %2530 = vrcp.f32 %v603_v29  ;;  %v607_v19 = vadd.f32 1e-06, %v606_v4 }
 0x2a3   : > { %2532 = vrcp.f32 %v605_v2 }
 0x2a4   : > { %2534 = vrcp.f32 %v607_v19 }
 0x2a6   : > { %v610_v51 = vpop.f32.mrb[12].mxu1 }
 0x2a7   : > { %v611_v55 = vadd.f32 1e-06, %v610_v51  ;;  %v612_v14 = vpop.f32.mrb[13].mxu1 }
 0x2a8   : > { %v613_v36 = vadd.f32 1e-06, %v612_v14  ;;  %v614_v6 = vpop.f32.mrb[14].mxu1 }
 0x2a9   : > { %2536 = vrcp.f32 %v611_v55  ;;  %v615_v49 = vadd.f32 1e-06, %v614_v6  ;;  %v616_v53 = vpop.f32.mrb[15].mxu1 }
 0x2aa   : > { %2538 = vrcp.f32 %v613_v36  ;;  %v617_v5 = vadd.f32 1e-06, %v616_v53  ;;  %v3940_v53 = vld [vmem:[#allocation19_spill] sm:$0xff] }
 0x2ab   : > { %v2529_v1 = vpop.eup %2528  ;;  %2540 = vrcp.f32 %v615_v49 }
 0x2ac   : > { %v2531_v13 = vpop.eup %2530  ;;  %2542 = vrcp.f32 %v617_v5  ;;  %v3172_v15 = vmul.f32 %v2529_v1, %v3115_v60   ;;  %v3941_v5 = vld [vmem:[#allocation5_spill] sm:$0xff] }
 0x2ad   : > { %v2533_v8 = vpop.eup %2532  ;;  %v3174_v18 = vmul.f32 %v2531_v13, %v539_v50  }
 0x2ae   : > { %v2535_v20 = vpop.eup %2534  ;;  %v620_v32 = vpop.f32.mrb[16].mxu1  ;;  %v3177_v12 = vmul.f32 %v2533_v8, %v3118_v46  }
 0x2af   : > { %v621_v17 = vadd.f32 1e-06, %v620_v32  ;;  %v622_v42 = vpop.f32.mrb[17].mxu1  ;;  %v3179_v44 = vmul.f32 %v2535_v20, %v541_v56  }
 0x2b0   : > { %v623_v58 = vadd.f32 1e-06, %v622_v42  ;;  %v624_v47 = vpop.f32.mrb[18].mxu1  ;;  %v3183_v52 = vpack.c.bf16 %v3177_v12, %v3172_v15 }
 0x2b1   : > { %2544 = vrcp.f32 %v621_v17  ;;  %v625_v60 = vadd.f32 1e-06, %v624_v47  ;;  %v626_v22 = vpop.f32.mrb[19].mxu1  ;;  %v672_v25 = vpack.c.bf16 %v3179_v44, %v3174_v18 }
 0x2b2   : > { %2546 = vrcp.f32 %v623_v58  ;;  %v627_v54 = vadd.f32 1e-06, %v626_v22 }
 0x2b3   : > { %v2537_v46 = vpop.eup %2536  ;;  %2548 = vrcp.f32 %v625_v60  ;;  %679 = vmatprep.subr.bf16.mxu0 %v672_v25  ;;  %744 = vmatprep.subr.bf16.mxu1 %v672_v25 }
 0x2b4   : > { %v2539_v3 = vpop.eup %2538  ;;  %2550 = vrcp.f32 %v627_v54  ;;  %776 = vmatprep.mubr.bf16.mxu1 %v672_v25  ;;  %680 = vmatpush1.bf16.xpose.msra.mxu0 %v3183_v52  ;;  %v3189_v27 = vmul.f32 %v2537_v46, %v3121_v48  }
 0x2b5   : > { %v2541_v23 = vpop.eup %2540  ;;  %745 = vmatpush1.bf16.xpose.msra.mxu1 %v3183_v52  ;;  %v3193_v43 = vmul.f32 %v2539_v3, %v3138_v40  }
 0x2b6   : > { %v2543_v41 = vpop.eup %2542  ;;  %v630_v50 = vpop.f32.mrb[20].mxu1  ;;  %v3196_v56 = vmul.f32 %v2541_v23, %v3124_v63  }
 0x2b7   : > { %v631_v62 = vadd.f32 1e-06, %v630_v50  ;;  %v632_v61 = vpop.f32.mrb[21].mxu1  ;;  %v3199_v24 = vmul.f32 %v2543_v41, %v3141_v9  }
 0x2b8   : > { %v633_v28 = vadd.f32 1e-06, %v632_v61  ;;  %v634_v38 = vpop.f32.mrb[22].mxu1  ;;  %v673_v48 = vpack.c.bf16 %v3196_v56, %v3189_v27 }
 0x2b9   : > { %2552 = vrcp.f32 %v631_v62  ;;  %v635_v45 = vadd.f32 1e-06, %v634_v38  ;;  %v636_v0 = vpop.f32.mrb[23].mxu1  ;;  %v674_v40 = vpack.c.bf16 %v3199_v24, %v3193_v43 }
 0x2ba   : > { %2554 = vrcp.f32 %v633_v28  ;;  %v637_v30 = vadd.f32 1e-06, %v636_v0 }
 0x2bb   : > { %v2545_v63 = vpop.eup %2544  ;;  %2556 = vrcp.f32 %v635_v45  ;;  %681 = vmatprep.subr.bf16.mxu0 %v674_v40  ;;  %746 = vmatprep.subr.bf16.mxu1 %v674_v40 }
 0x2bc   : > { %v2547_v33 = vpop.eup %2546  ;;  %2558 = vrcp.f32 %v637_v30  ;;  %682 = vmatpush1.bf16.xpose.msra.mxu0 %v673_v48  ;;  %v3206_v9 = vmul.f32 %v2545_v63, %v3127_v57  }
 0x2bd   : > { %v2549_v59 = vpop.eup %2548  ;;  %747 = vmatpush1.bf16.xpose.msra.mxu1 %v673_v48  ;;  %v3209_v21 = vmul.f32 %v2547_v33, %v3144_v16  }
 0x2be   : > { %v2551_v29 = vpop.eup %2550  ;;  %v3212_v31 = vmul.f32 %v2549_v59, %v3130_v35  }
 0x2bf   : > { %v3215_v2 = vmul.f32 %v2551_v29, %v3147_v7  }
 0x2c0   : > { %v675_v4 = vpack.c.bf16 %v3212_v31, %v3206_v9 }
 0x2c1   : > { %v676_v19 = vpack.c.bf16 %v3215_v2, %v3209_v21 }
 0x2c3   : > { %v2553_v57 = vpop.eup %2552  ;;  %683 = vmatprep.subr.bf16.mxu0 %v676_v19  ;;  %748 = vmatprep.subr.bf16.mxu1 %v676_v19 }
 0x2c4   : > { %v2555_v51 = vpop.eup %2554  ;;  %684 = vmatpush1.bf16.xpose.msra.mxu0 %v675_v4  ;;  %v3222_v16 = vmul.f32 %v2553_v57, %v3109_v37   ;;  %v3936_v37 = vld [vmem:[#allocation11_spill] sm:$0xff] }
 0x2c5   : > { %v2557_v55 = vpop.eup %2556  ;;  %749 = vmatpush1.bf16.xpose.msra.mxu1 %v675_v4  ;;  %v3225_v35 = vmul.f32 %v2555_v51, %v3150_v26   ;;  %v3939_v26 = vld [vmem:[#allocation18_spill] sm:$0xff] }
 0x2c6   : > { %v2559_v7 = vpop.eup %2558  ;;  %v3228_v14 = vmul.f32 %v2557_v55, %v3112_v39   ;;  %v3937_v39 = vld [vmem:[#allocation13_spill] sm:$0xff] }
 0x2c7   : > { %v3231_v36 = vmul.f32 %v2559_v7, %v3133_v34   ;;  %v3938_v34 = vld [vmem:[#allocation16_spill] sm:$0xff]  ;;  %v3942_v55 = vld [vmem:[#allocation9_spill] sm:$0xff] }
 0x2c8   : > { %v677_v6 = vpack.c.bf16 %v3228_v14, %v3222_v16  ;;  %v3943_v7 = vld [vmem:[#allocation12_spill] sm:$0xff] }
 0x2c9   : > { %v678_v49 = vpack.c.bf16 %v3231_v36, %v3225_v35 }
 0x2cb   : > { %685 = vmatprep.subr.bf16.mxu0 %v678_v49  ;;  %750 = vmatprep.subr.bf16.mxu1 %v678_v49 }
 0x2cc   : > { %686 = vmatpush1.bf16.xpose.msra.mxu0 %v677_v6 }
 0x2cd   : > { %751 = vmatpush1.bf16.xpose.msra.mxu1 %v677_v6 }
 0x2d3   : > { %712 = vmatmul.mubr.bf16.vlgmr.msra.gmra.mrb[16].mxu0 %v2928_v10 }
 0x2d4   : > { %777 = vmatmul.mubr.bf16.vlgmr.msra.gmra.mrb[24].mxu1 %v3183_v52  ;;  %719 = vmatprep.mubr.bf16.mxu0 %v2932_v11 }
 0x2d5   : > { %784 = vmatprep.mubr.bf16.mxu1 %v674_v40 }
 0x2db   : > { %720 = vmatmul.mubr.bf16.gmra.mrb[20].mxu0 %v3936_v37 }
 0x2dc   : > { %785 = vmatmul.mubr.bf16.gmra.mrb[28].mxu1 %v673_v48  ;;  %727 = vmatprep.mubr.bf16.mxu0 %v3937_v39 }
 0x2dd   : > { %792 = vmatprep.mubr.bf16.mxu1 %v676_v19 }
 0x2e3   : > { %728 = vmatmul.mubr.bf16.gmra.mrb[24].mxu0 %v3938_v34 }
 0x2e4   : > { %793 = vmatmul.mubr.bf16.gmra.mrb[32].mxu1 %v675_v4  ;;  %735 = vmatprep.mubr.bf16.mxu0 %v3939_v26 }
 0x2e5   : > { %800 = vmatprep.mubr.bf16.mxu1 %v678_v49 }
 0x2eb   : > { %736 = vmatmul.mubr.bf16.gmra.mrb[28].mxu0 %v3940_v53 }
 0x2ec   : > { %801 = vmatmul.mubr.bf16.gmra.mrb[36].mxu1 %v677_v6  ;;  %2206 = vmatprep.mubr.msk.bf16.mxu0 %vm241_vm0, %v3941_v5  ;;  %v3944_v6 = vld [vmem:[#allocation17_spill] sm:$0xff] }
 0x3a6   : > { %v3247_v1 = vpop.f32.mrb[16].mxu0 }
 0x3a7   : > { %v778_v13 = vpop.f32.mrb[24].mxu1  ;;  %v715_v8 = vpop.f32.mrb[17].mxu0 }
 0x3a8   : > { %v780_v20 = vpop.f32.mrb[25].mxu1  ;;  %v3249_v32 = vpop.f32.mrb[18].mxu0 }
 0x3a9   : > { %v781_v17 = vpop.f32.mrb[26].mxu1  ;;  %v718_v42 = vpop.f32.mrb[19].mxu0 }
 0x3aa   : > { %v809_v58 = vpack.c.bf16 %v781_v17, %v778_v13  ;;  %v783_v47 = vpop.f32.mrb[27].mxu1 }
 0x3ac   : > { %2198 = vmatprep.subr.bf16.mxu0 %v809_v58 }
 0x3ad   : > { %2199 = vmatpush3.bf16.msra.mxu0 %v809_v58 }
 0x3ae   : > { %v721_v52 = vpop.f32.mrb[20].mxu0 }
 0x3af   : > { %v786_v60 = vpop.f32.mrb[28].mxu1  ;;  %v723_v22 = vpop.f32.mrb[21].mxu0 }
 0x3b0   : > { %v788_v25 = vpop.f32.mrb[29].mxu1  ;;  %v724_v54 = vpop.f32.mrb[22].mxu0  ;;  %v3945_v22 = vld [vmem:[#allocation4_spill] sm:$0xff] }
 0x3b1   : > { %v789_v46 = vpop.f32.mrb[30].mxu1  ;;  %v726_v3 = vpop.f32.mrb[23].mxu0  ;;  %v815_v25 = vmul.f32 %v721_v52, %v3945_v22 }
 0x3b2   : > { %v810_v23 = vpack.c.bf16 %v789_v46, %v786_v60  ;;  %v791_v41 = vpop.f32.mrb[31].mxu1 }
 0x3b4   : > { %2200 = vmatprep.subr.bf16.mxu0 %v810_v23 }
 0x3b5   : > { %2201 = vmatpush3.bf16.msra.mxu0 %v810_v23  ;;  %v3946_v23 = vld [vmem:[#allocation2_spill] sm:$0xff] }
 0x3b6   : > { %v3251_v50 = vpop.f32.mrb[24].mxu0  ;;  %v813_v41 = vmul.f32 %v3247_v1, %v3946_v23 }
 0x3b7   : > { %v794_v62 = vpop.f32.mrb[32].mxu1  ;;  %v731_v61 = vpop.f32.mrb[25].mxu0 }
 0x3b8   : > { %v796_v28 = vpop.f32.mrb[33].mxu1  ;;  %v3253_v38 = vpop.f32.mrb[26].mxu0  ;;  %v3947_v61 = vld [vmem:[#allocation6_spill] sm:$0xff] }
 0x3b9   : > { %v797_v48 = vpop.f32.mrb[34].mxu1  ;;  %v734_v45 = vpop.f32.mrb[27].mxu0  ;;  %v816_v28 = vmul.f32 %v724_v54, %v3947_v61 }
 0x3ba   : > { %v811_v0 = vpack.c.bf16 %v797_v48, %v794_v62  ;;  %v799_v40 = vpop.f32.mrb[35].mxu1 }
 0x3bc   : > { %2202 = vmatprep.subr.bf16.mxu0 %v811_v0 }
 0x3bd   : > { %2203 = vmatpush3.bf16.msra.mxu0 %v811_v0  ;;  %v3948_v0 = vld [vmem:[#allocation3_spill] sm:$0xff] }
 0x3be   : > { %v737_v30 = vpop.f32.mrb[28].mxu0  ;;  %v814_v40 = vmul.f32 %v3249_v32, %v3948_v0 }
 0x3bf   : > { %v802_v63 = vpop.f32.mrb[36].mxu1  ;;  %v739_v33 = vpop.f32.mrb[29].mxu0 }
 0x3c0   : > { %v804_v59 = vpop.f32.mrb[37].mxu1  ;;  %v740_v29 = vpop.f32.mrb[30].mxu0 }
 0x3c1   : > { %v805_v4 = vpop.f32.mrb[38].mxu1  ;;  %v742_v19 = vpop.f32.mrb[31].mxu0 }
 0x3c2   : > { %v812_v57 = vpack.c.bf16 %v805_v4, %v802_v63  ;;  %v807_v51 = vpop.f32.mrb[39].mxu1  ;;  %v3949_v4 = vld [vmem:[#allocation14_spill] sm:$0xff] }
 0x3c3   : > { %v819_v19 = vmul.f32 %v737_v30, %v3949_v4  ;;  %v3950_v51 = vld [vmem:[#allocation7_spill] sm:$0xff] }
 0x3c4   : > { %2204 = vmatprep.subr.bf16.mxu0 %v812_v57  ;;  %v817_v1 = vmul.f32 %v3251_v50, %v3950_v51 }
 0x3c5   : > { %2205 = vmatpush3.bf16.msra.mxu0 %v812_v57 }
 0x3c8   : > { %2207 = vmatmul.mubr.msk.bf16.vlgmr.msra.gmra.mrb[32].mxu0 %vm241_vm0, %v3942_v55 }
 0x3c9   : > { %2210 = vmatprep.mubr.msk.bf16.mxu0 %vm241_vm0, %v3943_v7  ;;  %v3951_v7 = vld [vmem:[#allocation15_spill] sm:$0xff] }
 0x3d0   : > { %2211 = vmatmul.mubr.msk.bf16.gmra.mrb[36].mxu0 %vm241_vm0, %v3944_v6  ;;  %v820_v6 = vmul.f32 %v740_v29, %v3951_v7 }
 0x49b   : > { %v2208_v49 = vpop.f32.mrb[32].mxu0 }
 0x49c   : > { %v876_v37 = vadd.f32 1e-06, %v2208_v49  ;;  %v867_v39 = vpop.f32.mrb[33].mxu0 }
 0x49d   : > { %v868_v34 = vadd.f32 1e-06, %v867_v39  ;;  %v2209_v26 = vpop.f32.mrb[34].mxu0 }
 0x49e   : > { %2560 = vrcp.f32 %v876_v37  ;;  %v879_v53 = vadd.f32 1e-06, %v2209_v26  ;;  %v870_v5 = vpop.f32.mrb[35].mxu0  ;;  %v3952_v37 = vld [vmem:[#allocation8_spill] sm:$0xff] }
 0x49f   : > { %2562 = vrcp.f32 %v868_v34  ;;  %v871_v13 = vadd.f32 1e-06, %v870_v5  ;;  %v818_v39 = vmul.f32 %v3253_v38, %v3952_v37 }
 0x4a0   : > { %2564 = vrcp.f32 %v879_v53 }
 0x4a1   : > { %2566 = vrcp.f32 %v871_v13 }
 0x4a3   : > { %v2212_v8 = vpop.f32.mrb[36].mxu0 }
 0x4a4   : > { %v892_v20 = vadd.f32 1e-06, %v2212_v8  ;;  %v883_v17 = vpop.f32.mrb[37].mxu0 }
 0x4a5   : > { %v884_v42 = vadd.f32 1e-06, %v883_v17  ;;  %v2213_v58 = vpop.f32.mrb[38].mxu0 }
 0x4a6   : > { %2568 = vrcp.f32 %v892_v20  ;;  %v895_v47 = vadd.f32 1e-06, %v2213_v58  ;;  %v886_v60 = vpop.f32.mrb[39].mxu0 }
 0x4a7   : > { %2570 = vrcp.f32 %v884_v42  ;;  %v887_v46 = vadd.f32 1e-06, %v886_v60 }
 0x4a8   : > { %v2561_v3 = vpop.eup %2560  ;;  %2572 = vrcp.f32 %v895_v47 }
 0x4a9   : > { %v2563_v62 = vpop.eup %2562  ;;  %v908_v48 = vmul.f32 %v2561_v3, %v815_v25   ;;  %2574 = vrcp.f32 %v887_v46 }
 0x4aa   : > { %v2565_v45 = vpop.eup %2564  ;;  %v906_v63 = vmul.f32 %v2563_v62, %v813_v41  }
 0x4ab   : > { %v2567_v33 = vpop.eup %2566  ;;  %v909_v59 = vmul.f32 %v2565_v45, %v816_v28  }
 0x4ac   : > { %v907_v52 = vmul.f32 %v2567_v33, %v814_v40  }
 0x4b0   : > { %v2569_v57 = vpop.eup %2568 }
 0x4b1   : > { %v2571_v55 = vpop.eup %2570  ;;  %v912_v54 = vmul.f32 %v2569_v57, %v819_v19  }
 0x4b2   : > { %v2573_v49 = vpop.eup %2572  ;;  %v910_v34 = vmul.f32 %v2571_v55, %v817_v1  }
 0x4b3   : > { %v2575_v32 = vpop.eup %2574  ;;  %v913_v26 = vmul.f32 %v2573_v49, %v820_v6  }
 0x4b4   : > { %v911_v53 = vmul.f32 %v2575_v32, %v818_v39  }
 0x4b5 LB: >> { %3953 = vst [vmem:[#allocation20_spill] sm:$0xff] %v2766_v26  ;;  %3954 = vst [vmem:[#allocation21_spill] sm:$0xff] %v2774_v53  ;;  %v3956_v50 = vld [vmem:[#allocation10_spill] sm:$0xff]  ;;  %v3418_v38 = vpack.c.bf16 %v2790_v52, %v2794_v63  ;;  %v3424_v30 = vpack.c.bf16 %v2782_v59, %v2786_v48  ;;  %v3957_v29 = vld [vmem:[#allocation11_spill] sm:$0xff]  ;;  %v2865_v13 = vmov 0   ;;  %v3435_v8 = vpack.c.bf16 %v2774_v53, %v2778_v34  ;;  %s919_s22 = sadd.s32 1, %s2862_s22   ;;  %s2862_s22 = sphi %s3337_s22, %s919_s22   ;;  %v2858_v15 = vphi %v3172_v15, %v4010_v15   ;;  %v2854_v18 = vphi %v3174_v18, %v4009_v18   ;;  %v2850_v12 = vphi %v3177_v12, %v4008_v12   ;;  %v2846_v44 = vphi %v3179_v44, %v4007_v44   ;;  %v2842_v27 = vphi %v3189_v27, %v4006_v27   ;;  %v2838_v43 = vphi %v3193_v43, %v4005_v43   ;;  %v2834_v56 = vphi %v3196_v56, %v4004_v56   ;;  %v2830_v24 = vphi %v3199_v24, %v4003_v24   ;;  %v2826_v9 = vphi %v3206_v9, %v4002_v9   ;;  %v2822_v21 = vphi %v3209_v21, %v4001_v21   ;;  %v2818_v31 = vphi %v3212_v31, %v4000_v31   ;;  %v2814_v2 = vphi %v3215_v2, %v3999_v2   ;;  %v2810_v16 = vphi %v3222_v16, %v3998_v16   ;;  %v2806_v35 = vphi %v3225_v35, %v3997_v35   ;;  %v2802_v14 = vphi %v3228_v14, %v3996_v14   ;;  %v2798_v36 = vphi %v3231_v36, %v3995_v36   ;;  %v2794_v63 = vphi %v906_v63, %v3994_v63   ;;  %v2790_v52 = vphi %v907_v52, %v3993_v52   ;;  %v2786_v48 = vphi %v908_v48, %v3992_v48   ;;  %v2782_v59 = vphi %v909_v59, %v3991_v59   ;;  %v2778_v34 = vphi %v910_v34, %v3990_v34   ;;  %v2774_v53 = vphi %v911_v53, %v3989_v53   ;;  %v2770_v54 = vphi %v912_v54, %v3988_v54   ;;  %v2766_v26 = vphi %v913_v26, %v3987_v26  }
 0x4b6   : >> { %3955 = vst [vmem:[#allocation22_spill] sm:$0xff] %v2778_v34  ;;  %976 = vmatprep.subr.bf16.mxu0 %v3956_v50  ;;  %v3958_v5 = vld [vmem:[#allocation13_spill] sm:$0xff]  ;;  %1008 = vmatprep.mubr.bf16.mxu0 %v2865_v13  ;;  %v3959_v20 = vld [vmem:[#allocation16_spill] sm:$0xff]  ;;  %v3960_v17 = vld [vmem:[#allocation18_spill] sm:$0xff]  ;;  %v3444_v42 = vpack.c.bf16 %v2766_v26, %v2770_v54  ;;  %v1119_v47 = vpack.c.bf16 %v2846_v44, %v2854_v18  ;;  %p3666_p4 = scmp.ge.s32.totalorder %s919_s22, 6  }
 0x4b7   : >> { %977 = vmatpush1.bf16.msra.mxu0 %v2928_v10  ;;  %948 = vxpose.xlu0.c.b16.start [1/4] (short) (narrow) %v3418_v38, 64  ;;  %v3961_v58 = vld [vmem:[#allocation19_spill] sm:$0xff]  ;;  %v1118_v22 = vpack.c.bf16 %v2850_v12, %v2858_v15  ;;  %v1121_v25 = vpack.c.bf16 %v2830_v24, %v2838_v43  ;;  %v1120_v3 = vpack.c.bf16 %v2834_v56, %v2842_v27 }
 0x4b8   : >> { %978 = vmatprep.subr.bf16.mxu0 %v2932_v11  ;;  %2214 = vmatprep.subr.bf16.mxu1 %v3418_v38  ;;  %v1123_v62 = vpack.c.bf16 %v2814_v2, %v2822_v21  ;;  %v1122_v61 = vpack.c.bf16 %v2818_v31, %v2826_v9  ;;  %v1125_v28 = vpack.c.bf16 %v2798_v36, %v2806_v35 }
 0x4b9   : >> { %2215 = vmatpush3.bf16.msra.mxu1 %v3418_v38  ;;  %v1124_v45 = vpack.c.bf16 %v2802_v14, %v2810_v16 }
 0x4ba   : >> { %2216 = vmatprep.subr.bf16.mxu1 %v3424_v30 }
 0x4bb   : >> { %979 = vmatpush1.bf16.msra.mxu0 %v3957_v29  ;;  %949 = vxpose.xlu0.c.b16.cont [2/4] (short) (narrow) %v3424_v30, 64 }
 0x4bc   : >> { %980 = vmatprep.subr.bf16.mxu0 %v3958_v5 }
 0x4bd   : >> { %2217 = vmatpush3.bf16.msra.mxu1 %v3424_v30 }
 0x4be   : >> { %2218 = vmatprep.subr.bf16.mxu1 %v3435_v8 }
 0x4bf   : >> { %981 = vmatpush1.bf16.msra.mxu0 %v3959_v20  ;;  %950 = vxpose.xlu0.c.b16.cont [3/4] (short) (narrow) %v3435_v8, 64 }
 0x4c0   : >> { %982 = vmatprep.subr.bf16.mxu0 %v3960_v17 }
 0x4c1   : >> { %2219 = vmatpush3.bf16.msra.mxu1 %v3435_v8 }
 0x4c2   : >> { %2220 = vmatprep.subr.bf16.mxu1 %v3444_v42 }
 0x4c3   : >> { %983 = vmatpush1.bf16.msra.mxu0 %v3961_v58  ;;  %951 = vxpose.xlu0.c.b16.end [4/4] (short) (narrow) %v3444_v42, 64 }
 0x4c5   : >> { %2221 = vmatpush3.bf16.msra.mxu1 %v3444_v42 }
 0x4c6   : >> { %1154 = vmatprep.subr.bf16.mxu1 %v1119_v47 }
 0x51d   : >> { %v956_v60 = vpop.trf.xlu0 }
 0x51e   : >> { %2105 = vmatmul.mubr.msk.bf16.vlgmr.msra.gmra.mrb[0].mxu0 %vm241_vm0, %v956_v60  ;;  %2222 = vmatprep.mubr.msk.bf16.mxu1 %vm241_vm0, %v956_v60 }
 0x51f   : >> { %1018 = vmatprep.mubr.bf16.mxu0 %v2865_v13 }
 0x521   : >> { %v957_v46 = vpop.trf.xlu0 }
 0x522   : >> { %2223 = vmatmul.mubr.msk.bf16.vlgmr.msra.gmra.mrb[0].mxu1 %vm241_vm0, %v957_v46 }
 0x523   : >> { %1155 = vmatpush1.bf16.msra.mxu1 %v1118_v22 }
 0x524   : >> { %1156 = vmatprep.subr.bf16.mxu1 %v1121_v25 }
 0x525   : >> { %v958_v23 = vpop.trf.xlu0 }
 0x526   : >> { %2106 = vmatmul.mubr.msk.bf16.gmra.mrb[4].mxu0 %vm241_vm0, %v957_v46  ;;  %2226 = vmatprep.mubr.msk.bf16.mxu1 %vm241_vm0, %v958_v23 }
 0x527   : >> { %1028 = vmatprep.mubr.bf16.mxu0 %v2865_v13  ;;  %1157 = vmatpush1.bf16.msra.mxu1 %v1120_v3 }
 0x528   : >> { %1158 = vmatprep.subr.bf16.mxu1 %v1123_v62 }
 0x529   : >> { %v959_v41 = vpop.trf.xlu0 }
 0x52a   : >> { %2227 = vmatmul.mubr.msk.bf16.gmra.mrb[4].mxu1 %vm241_vm0, %v959_v41 }
 0x52b   : >> { %1186 = vmatprep.mubr.bf16.mxu1 %v2865_v13  ;;  %1159 = vmatpush1.bf16.msra.mxu1 %v1122_v61 }
 0x52c   : >> { %1160 = vmatprep.subr.bf16.mxu1 %v1125_v28 }
 0x52e   : >> { %2107 = vmatmul.mubr.msk.bf16.gmra.mrb[8].mxu0 %vm241_vm0, %v958_v23 }
 0x52f   : >> { %1038 = vmatprep.mubr.bf16.mxu0 %v2865_v13  ;;  %1161 = vmatpush1.bf16.msra.mxu1 %v1124_v45 }
 0x536   : >> { %2108 = vmatmul.mubr.msk.bf16.gmra.mrb[12].mxu0 %vm241_vm0, %v959_v41 }
 0x537   : >> { %1299 = vmatprep.mubr.bf16.mxu0 %v3956_v50 }
 0x5f1   : >> { %v1010_v0 = vpop.f32.mrb[0].mxu0 }
 0x5f2   : >> { %v1012_v40 = vpop.f32.mrb[1].mxu0 }
 0x5f3   : >> { %v1014_v33 = vpop.f32.mrb[2].mxu0 }
 0x5f4   : >> { %v3480_v4 = vpop.f32.mrb[3].mxu0 }
 0x5f5   : >> { %v2224_v19 = vpop.f32.mrb[0].mxu1 }
 0x5f6   : >> { %v1083_v57 = vpop.f32.mrb[1].mxu1 }
 0x5f7   : >> { %v2225_v51 = vpop.f32.mrb[2].mxu1 }
 0x5f8   : >> { %v1115_v1 = vpack.c.bf16 %v2225_v51, %v2224_v19  ;;  %v1086_v55 = vpop.f32.mrb[3].mxu1 }
 0x5f9   : >> { %v1114_v7 = vpack.c.bf16 %v1086_v55, %v1083_v57  ;;  %v3482_v6 = vpop.f32.mrb[4].mxu0 }
 0x5fa   : >> { %v3484_v49 = vpop.f32.mrb[5].mxu0 }
 0x5fb   : >> { %v3486_v37 = vpop.f32.mrb[6].mxu0  ;;  %2113 = vmatmul.mubr.msk.bf16.vlgmr.msra.gmra.mrb[8].mxu1 %vm241_vm0, %v1114_v7 }
 0x5fc   : >> { %v3489_v39 = vpop.f32.mrb[7].mxu0  ;;  %1196 = vmatprep.mubr.bf16.mxu1 %v2865_v13 }
 0x5fd   : >> { %v2228_v32 = vpop.f32.mrb[4].mxu1 }
 0x5fe   : >> { %v1099_v50 = vpop.f32.mrb[5].mxu1 }
 0x5ff   : >> { %v2229_v47 = vpop.f32.mrb[6].mxu1 }
 0x600   : >> { %v1117_v60 = vpack.c.bf16 %v2229_v47, %v2228_v32  ;;  %v1102_v22 = vpop.f32.mrb[7].mxu1 }
 0x601   : >> { %v3492_v25 = vpop.f32.mrb[8].mxu0  ;;  %v1116_v46 = vpack.c.bf16 %v1102_v22, %v1099_v50 }
 0x602   : >> { %v3494_v3 = vpop.f32.mrb[9].mxu0 }
 0x603   : >> { %v3496_v23 = vpop.f32.mrb[10].mxu0  ;;  %2114 = vmatmul.mubr.msk.bf16.gmra.mrb[12].mxu1 %vm241_vm0, %v1115_v1 }
 0x604   : >> { %v3499_v41 = vpop.f32.mrb[11].mxu0  ;;  %1206 = vmatprep.mubr.bf16.mxu1 %v2865_v13 }
 0x609   : >> { %v3502_v62 = vpop.f32.mrb[12].mxu0 }
 0x60a   : >> { %v3504_v61 = vpop.f32.mrb[13].mxu0 }
 0x60b   : >> { %v3506_v28 = vpop.f32.mrb[14].mxu0  ;;  %2115 = vmatmul.mubr.msk.bf16.gmra.mrb[16].mxu1 %vm241_vm0, %v1116_v46 }
 0x60c   : >> { %v3509_v45 = vpop.f32.mrb[15].mxu0  ;;  %1216 = vmatprep.mubr.bf16.mxu1 %v2865_v13 }
 0x613   : >> { %2116 = vmatmul.mubr.msk.bf16.gmra.mrb[20].mxu1 %vm241_vm0, %v1117_v60 }
 0x6ce   : >> { %v1188_v19 = vpop.f32.mrb[8].mxu1 }
 0x6cf   : >> { %v1189_v57 = vadd.f32 1e-06, %v1188_v19  ;;  %v1190_v51 = vpop.f32.mrb[9].mxu1  ;;  %v1126_v19 = vmul.f32 %v2858_v15, %v1010_v0 }
 0x6d0   : >> { %v1191_v1 = vadd.f32 1e-06, %v1190_v51  ;;  %v1192_v55 = vpop.f32.mrb[10].mxu1 }
 0x6d1   : >> { %2576 = vrcp.f32 %v1189_v57  ;;  %v1193_v7 = vadd.f32 1e-06, %v1192_v55  ;;  %v1194_v32 = vpop.f32.mrb[11].mxu1  ;;  %v1127_v57 = vmul.f32 %v2854_v18, %v1012_v40  ;;  %v1128_v55 = vmul.f32 %v2850_v12, %v1014_v33 }
 0x6d2   : >> { %2578 = vrcp.f32 %v1191_v1  ;;  %v1195_v50 = vadd.f32 1e-06, %v1194_v32 }
 0x6d3   : >> { %2580 = vrcp.f32 %v1193_v7 }
 0x6d4   : >> { %2582 = vrcp.f32 %v1195_v50  ;;  %v1129_v50 = vmul.f32 %v2846_v44, %v3480_v4 }
 0x6d6   : >> { %v1198_v47 = vpop.f32.mrb[12].mxu1 }
 0x6d7   : >> { %v1199_v22 = vadd.f32 1e-06, %v1198_v47  ;;  %v1200_v46 = vpop.f32.mrb[13].mxu1 }
 0x6d8   : >> { %v1201_v53 = vadd.f32 1e-06, %v1200_v46  ;;  %v1202_v26 = vpop.f32.mrb[14].mxu1 }
 0x6d9   : >> { %2584 = vrcp.f32 %v1199_v22  ;;  %v1203_v13 = vadd.f32 1e-06, %v1202_v26  ;;  %v1204_v60 = vpop.f32.mrb[15].mxu1 }
 0x6da   : >> { %2586 = vrcp.f32 %v1201_v53  ;;  %v1205_v51 = vadd.f32 1e-06, %v1204_v60 }
 0x6db   : >> { %v2577_v34 = vpop.eup %2576  ;;  %2588 = vrcp.f32 %v1203_v13 }
 0x6dc   : >> { %v2579_v1 = vpop.eup %2578  ;;  %2590 = vrcp.f32 %v1205_v51  ;;  %v3516_v15 = vmul.f32 %v2577_v34, %v1126_v19  }
 0x6dd   : >> { %v2581_v32 = vpop.eup %2580  ;;  %v3520_v18 = vmul.f32 %v2579_v1, %v1127_v57  }
 0x6de   : >> { %v3962_v7 = vmov %v3516_v15  ;;  %v2583_v26 = vpop.eup %2582  ;;  %v1208_v0 = vpop.f32.mrb[16].mxu1  ;;  %v3522_v12 = vmul.f32 %v2581_v32, %v1128_v55   ;;  %v1132_v55 = vmul.f32 %v2834_v56, %v3486_v37 }
 0x6df   : >> { %v3963_v47 = vmov %v3520_v18  ;;  %v1209_v53 = vadd.f32 1e-06, %v1208_v0  ;;  %v1210_v46 = vpop.f32.mrb[17].mxu1  ;;  %v3524_v44 = vmul.f32 %v2583_v26, %v1129_v50  }
 0x6e0   : >> { %v3964_v22 = vmov %v3522_v12  ;;  %v1211_v13 = vadd.f32 1e-06, %v1210_v46  ;;  %v1212_v60 = vpop.f32.mrb[18].mxu1  ;;  %v1130_v12 = vmul.f32 %v2842_v27, %v3482_v6 }
 0x6e1   : >> { %v3965_v40 = vmov %v3524_v44  ;;  %v3528_v34 = vpack.c.bf16 %v3964_v22, %v3962_v7  ;;  %2592 = vrcp.f32 %v1209_v53  ;;  %v1213_v15 = vadd.f32 1e-06, %v1212_v60  ;;  %v1214_v19 = vpop.f32.mrb[19].mxu1 }
 0x6e2   : >> { %v3532_v18 = vpack.c.bf16 %v3965_v40, %v3963_v47  ;;  %2594 = vrcp.f32 %v1211_v13  ;;  %v1215_v51 = vadd.f32 1e-06, %v1214_v19  ;;  %v1131_v44 = vmul.f32 %v2838_v43, %v3484_v49 }
 0x6e3   : >> { %v3966_v33 = vmov %v3528_v34  ;;  %v2585_v57 = vpop.eup %2584  ;;  %2596 = vrcp.f32 %v1213_v15  ;;  %v1133_v43 = vmul.f32 %v2830_v24, %v3489_v39 }
 0x6e4   : >> { %v3967_v4 = vmov %v3532_v18  ;;  %v2587_v1 = vpop.eup %2586  ;;  %2598 = vrcp.f32 %v1215_v51  ;;  %v3544_v27 = vmul.f32 %v2585_v57, %v1130_v12  }
 0x6e5   : >> { %1267 = vmatprep.subr.bf16.mxu0 %v3967_v4  ;;  %1332 = vmatprep.subr.bf16.mxu1 %v3967_v4  ;;  %v2589_v32 = vpop.eup %2588  ;;  %v3549_v49 = vmul.f32 %v2587_v1, %v1131_v44   ;;  %v1136_v44 = vmul.f32 %v2818_v31, %v3496_v23 }
 0x6e6   : >> { %1364 = vmatprep.mubr.bf16.mxu1 %v3967_v4  ;;  %1268 = vmatpush1.bf16.xpose.msra.mxu0 %v3966_v33  ;;  %v3968_v6 = vmov %v3544_v27  ;;  %v2591_v50 = vpop.eup %2590  ;;  %v1218_v26 = vpop.f32.mrb[20].mxu1  ;;  %v3551_v56 = vmul.f32 %v2589_v32, %v1132_v55   ;;  %v1137_v55 = vmul.f32 %v2814_v2, %v3499_v41  ;;  %v1138_v41 = vmul.f32 %v2810_v16, %v3502_v62 }
 0x6e7   : >> { %1333 = vmatpush1.bf16.xpose.msra.mxu1 %v3966_v33  ;;  %v1219_v37 = vadd.f32 1e-06, %v1218_v26  ;;  %v1220_v53 = vpop.f32.mrb[21].mxu1  ;;  %v3553_v24 = vmul.f32 %v2591_v50, %v1133_v43   ;;  %v1141_v62 = vmul.f32 %v2798_v36, %v3509_v45 }
 0x6e8   : >> { %v3969_v0 = vmov %v3551_v56  ;;  %v1221_v13 = vadd.f32 1e-06, %v1220_v53  ;;  %v1222_v60 = vpop.f32.mrb[22].mxu1  ;;  %v1134_v56 = vmul.f32 %v2826_v9, %v3492_v25 }
 0x6e9   : >> { %v3970_v46 = vmov %v3553_v24  ;;  %v3557_v27 = vpack.c.bf16 %v3969_v0, %v3968_v6  ;;  %2600 = vrcp.f32 %v1219_v37  ;;  %v1223_v39 = vadd.f32 1e-06, %v1222_v60  ;;  %v1224_v34 = vpop.f32.mrb[23].mxu1 }
 0x6ea   : >> { %v3561_v15 = vpack.c.bf16 %v3970_v46, %v3549_v49  ;;  %2602 = vrcp.f32 %v1221_v13  ;;  %v1225_v18 = vadd.f32 1e-06, %v1224_v34  ;;  %v1135_v24 = vmul.f32 %v2822_v21, %v3494_v3 }
 0x6eb   : >> { %v3971_v19 = vmov %v3557_v27  ;;  %v2593_v12 = vpop.eup %2592  ;;  %2604 = vrcp.f32 %v1223_v39 }
 0x6ec   : >> { %v3972_v51 = vmov %v3561_v15  ;;  %v2595_v57 = vpop.eup %2594  ;;  %2606 = vrcp.f32 %v1225_v18  ;;  %v3572_v9 = vmul.f32 %v2593_v12, %v1134_v56  }
 0x6ed   : >> { %1269 = vmatprep.subr.bf16.mxu0 %v3972_v51  ;;  %1334 = vmatprep.subr.bf16.mxu1 %v3972_v51  ;;  %v2597_v1 = vpop.eup %2596  ;;  %v3577_v21 = vmul.f32 %v2595_v57, %v1135_v24  }
 0x6ee   : >> { %1270 = vmatpush1.bf16.xpose.msra.mxu0 %v3971_v19  ;;  %v3973_v25 = vmov %v3572_v9  ;;  %v2599_v32 = vpop.eup %2598  ;;  %v3579_v31 = vmul.f32 %v2597_v1, %v1136_v44  }
 0x6ef   : >> { %1335 = vmatpush1.bf16.xpose.msra.mxu1 %v3971_v19  ;;  %v3974_v3 = vmov %v3577_v21  ;;  %v3581_v2 = vmul.f32 %v2599_v32, %v1137_v55   ;;  %v1139_v21 = vmul.f32 %v2806_v35, %v3504_v61 }
 0x6f0   : >> { %v3975_v50 = vmov %v3579_v31 }
 0x6f1   : >> { %v3976_v37 = vmov %v3581_v2  ;;  %v3585_v23 = vpack.c.bf16 %v3975_v50, %v3973_v25  ;;  %v1140_v2 = vmul.f32 %v2802_v14, %v3506_v28 }
 0x6f2   : >> { %v3589_v9 = vpack.c.bf16 %v3976_v37, %v3974_v3 }
 0x6f3   : >> { %v2601_v43 = vpop.eup %2600 }
 0x6f4   : >> { %v3977_v13 = vmov %v3589_v9  ;;  %v2603_v31 = vpop.eup %2602  ;;  %v3600_v16 = vmul.f32 %v2601_v43, %v1138_v41  }
 0x6f5   : >> { %1271 = vmatprep.subr.bf16.mxu0 %v3977_v13  ;;  %1336 = vmatprep.subr.bf16.mxu1 %v3977_v13  ;;  %v2605_v26 = vpop.eup %2604  ;;  %v3605_v35 = vmul.f32 %v2603_v31, %v1139_v21  }
 0x6f6   : >> { %1272 = vmatpush1.bf16.xpose.msra.mxu0 %v3585_v23  ;;  %v3978_v60 = vmov %v3600_v16  ;;  %v2607_v53 = vpop.eup %2606  ;;  %v3607_v14 = vmul.f32 %v2605_v26, %v1140_v2  }
 0x6f7   : >> { %1337 = vmatpush1.bf16.xpose.msra.mxu1 %v3585_v23  ;;  %v3979_v61 = vmov %v3605_v35  ;;  %v3609_v36 = vmul.f32 %v2607_v53, %v1141_v62  }
 0x6f8   : >> { %v3980_v39 = vmov %v3607_v14 }
 0x6f9   : >> { %v3981_v57 = vmov %v3609_v36  ;;  %v3613_v28 = vpack.c.bf16 %v3980_v39, %v3978_v60 }
 0x6fa   : >> { %v3617_v16 = vpack.c.bf16 %v3981_v57, %v3979_v61 }
 0x6fc   : >> { %v3982_v1 = vmov %v3617_v16 }
 0x6fd   : >> { %1273 = vmatprep.subr.bf16.mxu0 %v3982_v1  ;;  %1338 = vmatprep.subr.bf16.mxu1 %v3982_v1 }
 0x6fe   : >> { %1274 = vmatpush1.bf16.xpose.msra.mxu0 %v3613_v28 }
 0x6ff   : >> { %1339 = vmatpush1.bf16.xpose.msra.mxu1 %v3613_v28 }
 0x705   : >> { %1300 = vmatmul.mubr.bf16.vlgmr.msra.gmra.mrb[16].mxu0 %v2928_v10 }
 0x706   : >> { %1365 = vmatmul.mubr.bf16.vlgmr.msra.gmra.mrb[24].mxu1 %v3966_v33  ;;  %1307 = vmatprep.mubr.bf16.mxu0 %v2932_v11 }
 0x707   : >> { %1372 = vmatprep.mubr.bf16.mxu1 %v3972_v51 }
 0x70d   : >> { %1308 = vmatmul.mubr.bf16.gmra.mrb[20].mxu0 %v3957_v29 }
 0x70e   : >> { %1373 = vmatmul.mubr.bf16.gmra.mrb[28].mxu1 %v3971_v19  ;;  %1315 = vmatprep.mubr.bf16.mxu0 %v3958_v5 }
 0x70f   : >> { %1380 = vmatprep.mubr.bf16.mxu1 %v3977_v13 }
 0x715   : >> { %1316 = vmatmul.mubr.bf16.gmra.mrb[24].mxu0 %v3959_v20 }
 0x716   : >> { %1381 = vmatmul.mubr.bf16.gmra.mrb[32].mxu1 %v3585_v23  ;;  %1323 = vmatprep.mubr.bf16.mxu0 %v3960_v17 }
 0x717   : >> { %1388 = vmatprep.mubr.bf16.mxu1 %v3982_v1 }
 0x71d   : >> { %1324 = vmatmul.mubr.bf16.gmra.mrb[28].mxu0 %v3961_v58 }
 0x71e   : >> { %1389 = vmatmul.mubr.bf16.gmra.mrb[36].mxu1 %v3613_v28  ;;  %2238 = vmatprep.mubr.msk.bf16.mxu0 %vm241_vm0, %v3418_v38 }
 0x7d8   : >> { %v3639_v35 = vpop.f32.mrb[16].mxu0 }
 0x7d9   : >> { %v1366_v14 = vpop.f32.mrb[24].mxu1  ;;  %v1303_v36 = vpop.f32.mrb[17].mxu0 }
 0x7da   : >> { %v1368_v29 = vpop.f32.mrb[25].mxu1  ;;  %v3641_v5 = vpop.f32.mrb[18].mxu0 }
 0x7db   : >> { %v1369_v20 = vpop.f32.mrb[26].mxu1  ;;  %v1306_v45 = vpop.f32.mrb[19].mxu0 }
 0x7dc   : >> { %v1397_v27 = vpack.c.bf16 %v1369_v20, %v1366_v14  ;;  %v1371_v17 = vpop.f32.mrb[27].mxu1 }
 0x7de   : >> { %2230 = vmatprep.subr.bf16.mxu0 %v1397_v27 }
 0x7df   : >> { %2231 = vmatpush3.bf16.msra.mxu0 %v1397_v27 }
 0x7e0   : >> { %v1309_v34 = vpop.f32.mrb[20].mxu0 }
 0x7e1   : >> { %v1374_v58 = vpop.f32.mrb[28].mxu1  ;;  %v1311_v15 = vpop.f32.mrb[21].mxu0 }
 0x7e2   : >> { %v1376_v56 = vpop.f32.mrb[29].mxu1  ;;  %v1312_v18 = vpop.f32.mrb[22].mxu0 }
 0x7e3   : >> { %v1377_v12 = vpop.f32.mrb[30].mxu1  ;;  %v1314_v38 = vpop.f32.mrb[23].mxu0 }
 0x7e4   : >> { %v1398_v24 = vpack.c.bf16 %v1377_v12, %v1374_v58  ;;  %v1379_v44 = vpop.f32.mrb[31].mxu1 }
 0x7e6   : >> { %2232 = vmatprep.subr.bf16.mxu0 %v1398_v24 }
 0x7e7   : >> { %2233 = vmatpush3.bf16.msra.mxu0 %v1398_v24 }
 0x7e8   : >> { %v3643_v55 = vpop.f32.mrb[24].mxu0 }
 0x7e9   : >> { %v1382_v32 = vpop.f32.mrb[32].mxu1  ;;  %v1319_v9 = vpop.f32.mrb[25].mxu0 }
 0x7ea   : >> { %v1384_v41 = vpop.f32.mrb[33].mxu1  ;;  %v3645_v43 = vpop.f32.mrb[26].mxu0 }
 0x7eb   : >> { %v1385_v21 = vpop.f32.mrb[34].mxu1  ;;  %v1322_v31 = vpop.f32.mrb[27].mxu0 }
 0x7ec   : >> { %v1399_v2 = vpack.c.bf16 %v1385_v21, %v1382_v32  ;;  %v1387_v26 = vpop.f32.mrb[35].mxu1  ;;  %v1403_v31 = vmul.f32 %v2786_v48, %v1309_v34 }
 0x7ee   : >> { %2234 = vmatprep.subr.bf16.mxu0 %v1399_v2 }
 0x7ef   : >> { %2235 = vmatpush3.bf16.msra.mxu0 %v1399_v2 }
 0x7f0   : >> { %v1325_v62 = vpop.f32.mrb[28].mxu0 }
 0x7f1   : >> { %v1390_v53 = vpop.f32.mrb[36].mxu1  ;;  %v1327_v16 = vpop.f32.mrb[29].mxu0  ;;  %v1407_v48 = vmul.f32 %v2770_v54, %v1325_v62  ;;  %v4011_v62 = vld [vmem:[#allocation10_spill] sm:$0xff] (%p3666_p4) }
 0x7f2   : >> { %v1392_v14 = vpop.f32.mrb[37].mxu1  ;;  %v1328_v36 = vpop.f32.mrb[30].mxu0 }
 0x7f3   : >> { %v1393_v29 = vpop.f32.mrb[38].mxu1  ;;  %v1330_v20 = vpop.f32.mrb[31].mxu0  ;;  %v1404_v14 = vmul.f32 %v2782_v59, %v1312_v18  ;;  %v3985_v18 = vld [vmem:[#allocation21_spill] sm:$0xff] }
 0x7f4   : >> { %v1400_v45 = vpack.c.bf16 %v1393_v29, %v1390_v53  ;;  %v1395_v27 = vpop.f32.mrb[39].mxu1  ;;  %v1401_v53 = vmul.f32 %v2794_v63, %v3639_v35 }
 0x7f6   : >> { %2236 = vmatprep.subr.bf16.mxu0 %v1400_v45 }
 0x7f7   : >> { %2237 = vmatpush3.bf16.msra.mxu0 %v1400_v45  ;;  %v1402_v45 = vmul.f32 %v2790_v52, %v3641_v5 }
 0x7f8   : > { %1534 = vmatprep.subr.bf16.mxu0 (%p3666_p4), %v4011_v62 }
 0x7fa   : >> { %2239 = vmatmul.mubr.msk.bf16.vlgmr.msra.gmra.mrb[32].mxu0 %vm241_vm0, %v3424_v30 }
 0x7fb   : >> { %2242 = vmatprep.mubr.msk.bf16.mxu0 %vm241_vm0, %v3435_v8  ;;  %1535 = vmatpush1.bf16.msra.mxu0 (%p3666_p4), %v2928_v10  ;;  %v4014_v10 = vld [vmem:[#allocation13_spill] sm:$0xff] (%p3666_p4) }
 0x7fc   : > { %1536 = vmatprep.subr.bf16.mxu0 (%p3666_p4), %v2932_v11 }
 0x802   : >> { %2243 = vmatmul.mubr.msk.bf16.gmra.mrb[36].mxu0 %vm241_vm0, %v3444_v42 }
 0x8cd   : >> { %v2240_v17 = vpop.f32.mrb[32].mxu0 }
 0x8ce   : >> { %v1464_v58 = vadd.f32 1e-06, %v2240_v17  ;;  %v1455_v15 = vpop.f32.mrb[33].mxu0 }
 0x8cf   : >> { %v1456_v56 = vadd.f32 1e-06, %v1455_v15  ;;  %v2241_v12 = vpop.f32.mrb[34].mxu0  ;;  %v3983_v15 = vld [vmem:[#allocation22_spill] sm:$0xff] }
 0x8d0   : >> { %2608 = vrcp.f32 %v1464_v58  ;;  %v1467_v38 = vadd.f32 1e-06, %v2241_v12  ;;  %v1458_v24 = vpop.f32.mrb[35].mxu0  ;;  %v1405_v63 = vmul.f32 %v3983_v15, %v3643_v55  ;;  %v4010_v15 = vmov %v3962_v7 }
 0x8d1   : >> { %2610 = vrcp.f32 %v1456_v56  ;;  %v1459_v44 = vadd.f32 1e-06, %v1458_v24  ;;  %v3984_v56 = vld [vmem:[#allocation20_spill] sm:$0xff]  ;;  %v1406_v24 = vmul.f32 %v3985_v18, %v3645_v43  ;;  %v4005_v43 = vmov %v3549_v49 }
 0x8d2   : >> { %2612 = vrcp.f32 %v1467_v38  ;;  %v1408_v12 = vmul.f32 %v3984_v56, %v1328_v36  ;;  %v3995_v36 = vmov %v3981_v57  ;;  %v4004_v56 = vmov %v3969_v0  ;;  %v4015_v43 = vld [vmem:[#allocation16_spill] sm:$0xff] (%p3666_p4) }
 0x8d3   : >> { %2614 = vrcp.f32 %v1459_v44  ;;  %v4007_v44 = vmov %v3965_v40  ;;  %v4009_v18 = vmov %v3963_v47  ;;  %v4016_v36 = vld [vmem:[#allocation18_spill] sm:$0xff] (%p3666_p4) }
 0x8d4   : > { %v4017_v44 = vld [vmem:[#allocation19_spill] sm:$0xff] (%p3666_p4) }
 0x8d5   : >> { %v2244_v32 = vpop.f32.mrb[36].mxu0 }
 0x8d6   : >> { %v1480_v30 = vadd.f32 1e-06, %v2244_v32  ;;  %v1471_v9 = vpop.f32.mrb[37].mxu0 }
 0x8d7   : >> { %v1472_v41 = vadd.f32 1e-06, %v1471_v9  ;;  %v2245_v8 = vpop.f32.mrb[38].mxu0  ;;  %v4002_v9 = vmov %v3973_v25 }
 0x8d8   : >> { %2616 = vrcp.f32 %v1480_v30  ;;  %v1483_v21 = vadd.f32 1e-06, %v2245_v8  ;;  %v1474_v42 = vpop.f32.mrb[39].mxu0  ;;  %v4012_v8 = vmov (%p3666_p4), 0  }
 0x8d9   : >> { %2618 = vrcp.f32 %v1472_v41  ;;  %v1475_v2 = vadd.f32 1e-06, %v1474_v42  ;;  %1566 = vmatprep.mubr.bf16.mxu0 (%p3666_p4), %v4012_v8 }
 0x8da   : >> { %v2609_v26 = vpop.eup %2608  ;;  %2620 = vrcp.f32 %v1483_v21  ;;  %v4001_v21 = vmov %v3974_v3 }
 0x8db   : >> { %v2611_v16 = vpop.eup %2610  ;;  %v1496_v29 = vmul.f32 %v2609_v26, %v1403_v31   ;;  %2622 = vrcp.f32 %v1475_v2  ;;  %v3999_v2 = vmov %v3976_v37  ;;  %v4000_v31 = vmov %v3975_v50 }
 0x8dc   : >> { %v2613_v20 = vpop.eup %2612  ;;  %v1494_v17 = vmul.f32 %v2611_v16, %v1401_v53   ;;  %v3998_v16 = vmov %v3978_v60 }
 0x8dd   : >> { %v2615_v27 = vpop.eup %2614  ;;  %v1497_v58 = vmul.f32 %v2613_v20, %v1404_v14   ;;  %v3996_v14 = vmov %v3980_v39  ;;  %v4013_v20 = vld [vmem:[#allocation11_spill] sm:$0xff] (%p3666_p4) }
 0x8de   : >> { %v1495_v38 = vmul.f32 %v2615_v27, %v1402_v45   ;;  %v4006_v27 = vmov %v3968_v6  ;;  %1537 = vmatpush1.bf16.msra.mxu0 (%p3666_p4), %v4013_v20 }
 0x8df   : > { %v3744_v42 = vpack.c.bf16 (%p3666_p4), %v1497_v58, %v1496_v29  ;;  %1538 = vmatprep.subr.bf16.mxu0 (%p3666_p4), %v4014_v10 }
 0x8e0   : > { %v3738_v55 = vpack.c.bf16 (%p3666_p4), %v1495_v38, %v1494_v17 }
 0x8e2   : >> { %v2617_v34 = vpop.eup %2616  ;;  %918 = sbr.rel (!%p3666_p4) target bundleno = 1205 (0x4b5), region = 68  ;;  %1506 = vxpose.xlu0.c.b16.start [1/4] (short) (narrow) (%p3666_p4), %v3738_v55, 64  ;;  %2246 = vmatprep.subr.bf16.mxu1 (%p3666_p4), %v3738_v55 }
 0x8e3   : >> { %v2619_v35 = vpop.eup %2618  ;;  %v1500_v32 = vmul.f32 %v2617_v34, %v1407_v48   ;;  %v3992_v48 = vmov %v1496_v29  ;;  %2247 = vmatpush3.bf16.msra.mxu1 (%p3666_p4), %v3738_v55  ;;  %1539 = vmatpush1.bf16.msra.mxu0 (%p3666_p4), %v4015_v43 }
 0x8e4   : >> { %v2621_v59 = vpop.eup %2620  ;;  %v1498_v30 = vmul.f32 %v2619_v35, %v1405_v63   ;;  %v3994_v63 = vmov %v1494_v17  ;;  %v3997_v35 = vmov %v3979_v61  ;;  %2248 = vmatprep.subr.bf16.mxu1 (%p3666_p4), %v3744_v42  ;;  %1540 = vmatprep.subr.bf16.mxu0 (%p3666_p4), %v4016_v36 }
 0x8e5   : >> { %v2623_v52 = vpop.eup %2622  ;;  %v1501_v5 = vmul.f32 %v2621_v59, %v1408_v12   ;;  %v3988_v54 = vmov %v1500_v32  ;;  %v3991_v59 = vmov %v1497_v58  ;;  %v4008_v12 = vmov %v3964_v22 }
 0x8e6   : >> { %v1499_v41 = vmul.f32 %v2623_v52, %v1406_v24   ;;  %v3990_v34 = vmov %v1498_v30  ;;  %v3993_v52 = vmov %v1495_v38  ;;  %v4003_v24 = vmov %v3970_v46  ;;  %1507 = vxpose.xlu0.c.b16.cont [2/4] (short) (narrow) (%p3666_p4), %v3744_v42, 64 }
 0x8e7   : >> { %v3987_v26 = vmov %v1501_v5  ;;  %2249 = vmatpush3.bf16.msra.mxu1 (%p3666_p4), %v3744_v42  ;;  %v3759_v11 = vpack.c.bf16 (%p3666_p4), %v1501_v5, %v1500_v32  ;;  %1541 = vmatpush1.bf16.msra.mxu0 (%p3666_p4), %v4017_v44 }
 0x8e8   : >> { %v3989_v53 = vmov %v1499_v41  ;;  %v3752_v54 = vpack.c.bf16 (%p3666_p4), %v1499_v41, %v1498_v30 }
 0x8ea   : > { %2250 = vmatprep.subr.bf16.mxu1 %v3752_v54  ;;  %1508 = vxpose.xlu0.c.b16.cont [3/4] (short) (narrow) %v3752_v54, 64 }
 0x8eb   : > { %2251 = vmatpush3.bf16.msra.mxu1 %v3752_v54 }
 0x8ec   : > { %2252 = vmatprep.subr.bf16.mxu1 %v3759_v11 }
 0x8ee   : > { %1509 = vxpose.xlu0.c.b16.end [4/4] (short) (narrow) %v3759_v11, 64 }
 0x8ef   : > { %2253 = vmatpush3.bf16.msra.mxu1 %v3759_v11 }
 0x8f0   : > { %1712 = vmatprep.subr.bf16.mxu1 %v3967_v4 }
 0x948   : > { %v1514_v9 = vpop.trf.xlu0 }
 0x949   : > { %2121 = vmatmul.mubr.msk.bf16.vlgmr.msra.gmra.mrb[0].mxu0 %vm241_vm0, %v1514_v9  ;;  %2254 = vmatprep.mubr.msk.bf16.mxu1 %vm241_vm0, %v1514_v9 }
 0x94a   : > { %1576 = vmatprep.mubr.bf16.mxu0 %v4012_v8 }
 0x94c   : > { %v1515_v21 = vpop.trf.xlu0 }
 0x94d   : > { %2255 = vmatmul.mubr.msk.bf16.vlgmr.msra.gmra.mrb[0].mxu1 %vm241_vm0, %v1515_v21 }
 0x94e   : > { %1713 = vmatpush1.bf16.msra.mxu1 %v3966_v33 }
 0x94f   : > { %1714 = vmatprep.subr.bf16.mxu1 %v3972_v51 }
 0x950   : > { %v1516_v31 = vpop.trf.xlu0 }
 0x951   : > { %2122 = vmatmul.mubr.msk.bf16.gmra.mrb[4].mxu0 %vm241_vm0, %v1515_v21  ;;  %2258 = vmatprep.mubr.msk.bf16.mxu1 %vm241_vm0, %v1516_v31 }
 0x952   : > { %1586 = vmatprep.mubr.bf16.mxu0 %v4012_v8  ;;  %1715 = vmatpush1.bf16.msra.mxu1 %v3971_v19 }
 0x953   : > { %1716 = vmatprep.subr.bf16.mxu1 %v3977_v13 }
 0x954   : > { %v1517_v4 = vpop.trf.xlu0 }
 0x955   : > { %2259 = vmatmul.mubr.msk.bf16.gmra.mrb[4].mxu1 %vm241_vm0, %v1517_v4 }
 0x956   : > { %1717 = vmatpush1.bf16.msra.mxu1 %v3585_v23  ;;  %1744 = vmatprep.mubr.bf16.mxu1 %v4012_v8 }
 0x957   : > { %1718 = vmatprep.subr.bf16.mxu1 %v3982_v1 }
 0x959   : > { %2123 = vmatmul.mubr.msk.bf16.gmra.mrb[8].mxu0 %vm241_vm0, %v1516_v31 }
 0x95a   : > { %1596 = vmatprep.mubr.bf16.mxu0 %v4012_v8  ;;  %1719 = vmatpush1.bf16.msra.mxu1 %v3613_v28 }
 0x961   : > { %2124 = vmatmul.mubr.msk.bf16.gmra.mrb[12].mxu0 %vm241_vm0, %v1517_v4 }
 0x962   : > { %1869 = vmatprep.mubr.bf16.mxu0 %v4012_v8 }
 0xa1c   : > { %v1568_v33 = vpop.f32.mrb[0].mxu0 }
 0xa1d   : > { %v1570_v19 = vpop.f32.mrb[1].mxu0 }
 0xa1e   : > { %v1572_v51 = vpop.f32.mrb[2].mxu0 }
 0xa1f   : > { %v3788_v13 = vpop.f32.mrb[3].mxu0 }
 0xa20   : > { %v2256_v23 = vpop.f32.mrb[0].mxu1 }
 0xa21   : > { %v1641_v2 = vpop.f32.mrb[1].mxu1 }
 0xa22   : > { %v2257_v26 = vpop.f32.mrb[2].mxu1 }
 0xa23   : > { %v1673_v53 = vpack.c.bf16 %v2257_v26, %v2256_v23  ;;  %v1644_v1 = vpop.f32.mrb[3].mxu1  ;;  %v1684_v23 = vmul.f32 %v1568_v33, %v3962_v7 }
 0xa24   : > { %v1672_v16 = vpack.c.bf16 %v1644_v1, %v1641_v2  ;;  %v3790_v14 = vpop.f32.mrb[4].mxu0 }
 0xa25   : > { %v3792_v29 = vpop.f32.mrb[5].mxu0 }
 0xa26   : > { %v3794_v28 = vpop.f32.mrb[6].mxu0  ;;  %2129 = vmatmul.mubr.msk.bf16.vlgmr.msra.gmra.mrb[8].mxu1 %vm241_vm0, %v1672_v16  ;;  %v1686_v16 = vmul.f32 %v1572_v51, %v3964_v22  ;;  %v1688_v51 = vmul.f32 %v3790_v14, %v3968_v6 }
 0xa27   : > { %v3797_v45 = vpop.f32.mrb[7].mxu0  ;;  %1754 = vmatprep.mubr.bf16.mxu1 %v4012_v8 }
 0xa28   : > { %v2260_v17 = vpop.f32.mrb[4].mxu1  ;;  %v1691_v6 = vmul.f32 %v3797_v45, %v3970_v46 }
 0xa29   : > { %v1657_v27 = vpop.f32.mrb[5].mxu1 }
 0xa2a   : > { %v2261_v58 = vpop.f32.mrb[6].mxu1 }
 0xa2b   : > { %v1675_v38 = vpack.c.bf16 %v2261_v58, %v2260_v17  ;;  %v1660_v48 = vpop.f32.mrb[7].mxu1  ;;  %v1687_v58 = vmul.f32 %v3788_v13, %v3965_v40  ;;  %v1689_v13 = vmul.f32 %v3792_v29, %v3549_v49 }
 0xa2c   : > { %v3800_v34 = vpop.f32.mrb[8].mxu0  ;;  %v1674_v15 = vpack.c.bf16 %v1660_v48, %v1657_v27 }
 0xa2d   : > { %v3802_v63 = vpop.f32.mrb[9].mxu0 }
 0xa2e   : > { %v3804_v35 = vpop.f32.mrb[10].mxu0  ;;  %2130 = vmatmul.mubr.msk.bf16.gmra.mrb[12].mxu1 %vm241_vm0, %v1673_v53  ;;  %v1685_v53 = vmul.f32 %v1570_v19, %v3963_v47  ;;  %v1693_v45 = vmul.f32 %v3802_v63, %v3974_v3 }
 0xa2f   : > { %v3807_v56 = vpop.f32.mrb[11].mxu0  ;;  %1764 = vmatprep.mubr.bf16.mxu1 %v4012_v8 }
 0xa34   : > { %v3810_v12 = vpop.f32.mrb[12].mxu0 }
 0xa35   : > { %v3812_v32 = vpop.f32.mrb[13].mxu0 }
 0xa36   : > { %v3814_v59 = vpop.f32.mrb[14].mxu0  ;;  %2131 = vmatmul.mubr.msk.bf16.gmra.mrb[16].mxu1 %vm241_vm0, %v1674_v15 }
 0xa37   : > { %v3817_v18 = vpop.f32.mrb[15].mxu0  ;;  %1774 = vmatprep.mubr.bf16.mxu1 %v4012_v8 }
 0xa3e   : > { %2132 = vmatmul.mubr.msk.bf16.gmra.mrb[20].mxu1 %vm241_vm0, %v1675_v38 }
 0xa3f   : > { %1899 = vmatprep.mubr.bf16.mxu1 %v4012_v8 }
 0xaf9   : > { %v1746_v24 = vpop.f32.mrb[8].mxu1 }
 0xafa   : > { %v1747_v30 = vadd.f32 1e-06, %v1746_v24  ;;  %v1748_v52 = vpop.f32.mrb[9].mxu1 }
 0xafb   : > { %v1749_v5 = vadd.f32 1e-06, %v1748_v52  ;;  %v1750_v41 = vpop.f32.mrb[10].mxu1 }
 0xafc   : > { %2624 = vrcp.f32 %v1747_v30  ;;  %v1751_v62 = vadd.f32 1e-06, %v1750_v41  ;;  %v1752_v20 = vpop.f32.mrb[11].mxu1 }
 0xafd   : > { %2626 = vrcp.f32 %v1749_v5  ;;  %v1753_v10 = vadd.f32 1e-06, %v1752_v20 }
 0xafe   : > { %2628 = vrcp.f32 %v1751_v62 }
 0xaff   : > { %2630 = vrcp.f32 %v1753_v10  ;;  %v1690_v10 = vmul.f32 %v3794_v28, %v3969_v0 }
 0xb01   : > { %v1756_v43 = vpop.f32.mrb[12].mxu1 }
 0xb02   : > { %v1757_v36 = vadd.f32 1e-06, %v1756_v43  ;;  %v1758_v44 = vpop.f32.mrb[13].mxu1 }
 0xb03   : > { %v1759_v9 = vadd.f32 1e-06, %v1758_v44  ;;  %v1760_v21 = vpop.f32.mrb[14].mxu1 }
 0xb04   : > { %2632 = vrcp.f32 %v1757_v36  ;;  %v1761_v31 = vadd.f32 1e-06, %v1760_v21  ;;  %v1762_v4 = vpop.f32.mrb[15].mxu1 }
 0xb05   : > { %2634 = vrcp.f32 %v1759_v9  ;;  %v1763_v2 = vadd.f32 1e-06, %v1762_v4 }
 0xb06   : > { %v2625_v26 = vpop.eup %2624  ;;  %2636 = vrcp.f32 %v1761_v31 }
 0xb07   : > { %v2627_v1 = vpop.eup %2626  ;;  %2638 = vrcp.f32 %v1763_v2  ;;  %v1801_v17 = vmul.f32 %v2625_v26, %v1684_v23 }
 0xb08   : > { %v2629_v27 = vpop.eup %2628  ;;  %v1802_v38 = vmul.f32 %v2627_v1, %v1685_v53  ;;  %v1692_v53 = vmul.f32 %v3800_v34, %v3973_v25  ;;  %v1695_v25 = vmul.f32 %v3807_v56, %v3976_v37 }
 0xb09   : > { %v2631_v48 = vpop.eup %2630  ;;  %v1766_v15 = vpop.f32.mrb[16].mxu1  ;;  %v1803_v24 = vmul.f32 %v2629_v27, %v1686_v16 }
 0xb0a   : > { %v1767_v7 = vadd.f32 1e-06, %v1766_v15  ;;  %v1768_v33 = vpop.f32.mrb[17].mxu1  ;;  %v1804_v30 = vmul.f32 %v2631_v48, %v1687_v58 }
 0xb0b   : > { %v1769_v52 = vadd.f32 1e-06, %v1768_v33  ;;  %v1770_v5 = vpop.f32.mrb[18].mxu1  ;;  %v1817_v47 = vpack.c.bf16 %v1803_v24, %v1801_v17  ;;  %v1694_v17 = vmul.f32 %v3804_v35, %v3975_v50  ;;  %v1696_v24 = vmul.f32 %v3810_v12, %v3978_v60 }
 0xb0c   : > { %2640 = vrcp.f32 %v1767_v7  ;;  %v1771_v19 = vadd.f32 1e-06, %v1770_v5  ;;  %v1772_v41 = vpop.f32.mrb[19].mxu1  ;;  %v1818_v22 = vpack.c.bf16 %v1804_v30, %v1802_v38  ;;  %v1697_v50 = vmul.f32 %v3812_v32, %v3979_v61 }
 0xb0d   : > { %2642 = vrcp.f32 %v1769_v52  ;;  %v1773_v62 = vadd.f32 1e-06, %v1772_v41  ;;  %v1698_v33 = vmul.f32 %v3814_v59, %v3980_v39  ;;  %v1699_v30 = vmul.f32 %v3817_v18, %v3981_v57 }
 0xb0e   : > { %v2633_v40 = vpop.eup %2632  ;;  %2644 = vrcp.f32 %v1771_v19  ;;  %1837 = vmatprep.subr.bf16.mxu0 %v1818_v22  ;;  %2262 = vmatprep.subr.bf16.mxu1 %v1818_v22 }
 0xb0f   : > { %v2635_v20 = vpop.eup %2634  ;;  %2646 = vrcp.f32 %v1773_v62  ;;  %1838 = vmatpush1.bf16.msra.mxu0 %v1817_v47  ;;  %2266 = vmatpush1.bf16.msra.mxu1 %v1817_v47  ;;  %v1805_v43 = vmul.f32 %v2633_v40, %v1688_v51 }
 0xb10   : > { %v2637_v36 = vpop.eup %2636  ;;  %v1806_v14 = vmul.f32 %v2635_v20, %v1689_v13 }
 0xb11   : > { %v2639_v44 = vpop.eup %2638  ;;  %v1776_v9 = vpop.f32.mrb[20].mxu1  ;;  %v1807_v21 = vmul.f32 %v2637_v36, %v1690_v10 }
 0xb12   : > { %v1777_v49 = vadd.f32 1e-06, %v1776_v9  ;;  %v1778_v29 = vpop.f32.mrb[21].mxu1  ;;  %v1808_v31 = vmul.f32 %v2639_v44, %v1691_v6 }
 0xb13   : > { %v1779_v4 = vadd.f32 1e-06, %v1778_v29  ;;  %v1780_v23 = vpop.f32.mrb[22].mxu1  ;;  %v1819_v2 = vpack.c.bf16 %v1807_v21, %v1805_v43 }
 0xb14   : > { %2648 = vrcp.f32 %v1777_v49  ;;  %v1781_v0 = vadd.f32 1e-06, %v1780_v23  ;;  %v1782_v28 = vpop.f32.mrb[23].mxu1  ;;  %v1820_v26 = vpack.c.bf16 %v1808_v31, %v1806_v14 }
 0xb15   : > { %2650 = vrcp.f32 %v1779_v4  ;;  %v1783_v1 = vadd.f32 1e-06, %v1782_v28 }
 0xb16   : > { %v2641_v46 = vpop.eup %2640  ;;  %2652 = vrcp.f32 %v1781_v0  ;;  %1839 = vmatprep.subr.bf16.mxu0 %v1820_v26  ;;  %2263 = vmatprep.subr.bf16.mxu1 %v1820_v26 }
 0xb17   : > { %v2643_v16 = vpop.eup %2642  ;;  %2654 = vrcp.f32 %v1783_v1  ;;  %1840 = vmatpush1.bf16.msra.mxu0 %v1819_v2  ;;  %2267 = vmatpush1.bf16.msra.mxu1 %v1819_v2  ;;  %v1809_v27 = vmul.f32 %v2641_v46, %v1692_v53 }
 0xb18   : > { %v2645_v58 = vpop.eup %2644  ;;  %v1810_v34 = vmul.f32 %v2643_v16, %v1693_v45 }
 0xb19   : > { %v2647_v38 = vpop.eup %2646  ;;  %v1811_v48 = vmul.f32 %v2645_v58, %v1694_v17 }
 0xb1a   : > { %v1812_v15 = vmul.f32 %v2647_v38, %v1695_v25 }
 0xb1b   : > { %v1821_v3 = vpack.c.bf16 %v1811_v48, %v1809_v27 }
 0xb1c   : > { %v1822_v63 = vpack.c.bf16 %v1812_v15, %v1810_v34 }
 0xb1e   : > { %v2649_v7 = vpop.eup %2648  ;;  %1841 = vmatprep.subr.bf16.mxu0 %v1822_v63  ;;  %2264 = vmatprep.subr.bf16.mxu1 %v1822_v63 }
 0xb1f   : > { %v2651_v35 = vpop.eup %2650  ;;  %1842 = vmatpush1.bf16.msra.mxu0 %v1821_v3  ;;  %2268 = vmatpush1.bf16.msra.mxu1 %v1821_v3  ;;  %v1813_v37 = vmul.f32 %v2649_v7, %v1696_v24 }
 0xb20   : > { %v2653_v56 = vpop.eup %2652  ;;  %v1814_v52 = vmul.f32 %v2651_v35, %v1697_v50 }
 0xb21   : > { %v2655_v5 = vpop.eup %2654  ;;  %v1815_v60 = vmul.f32 %v2653_v56, %v1698_v33 }
 0xb22   : > { %v1816_v12 = vmul.f32 %v2655_v5, %v1699_v30 }
 0xb23   : > { %v1823_v47 = vpack.c.bf16 %v1815_v60, %v1813_v37 }
 0xb24   : > { %v1824_v61 = vpack.c.bf16 %v1816_v12, %v1814_v52 }
 0xb26   : > { %1843 = vmatprep.subr.bf16.mxu0 %v1824_v61  ;;  %2265 = vmatprep.subr.bf16.mxu1 %v1824_v61 }
 0xb27   : > { %1844 = vmatpush1.bf16.msra.mxu0 %v1823_v47  ;;  %2269 = vmatpush1.bf16.msra.mxu1 %v1823_v47 }
 0xb2a   : > { %2133 = vmatmul.mubr.msk.bf16.vlgmr.msra.gmra.mrb[16].mxu0 %vm241_vm0, %v3738_v55  ;;  %2136 = vmatmul.mubr.msk.bf16.vlgmr.msra.gmra.mrb[24].mxu1 %vm241_vm0, %v3759_v11 }
 0xb2b   : > { %1879 = vmatprep.mubr.bf16.mxu0 %v4012_v8 }
 0xb32   : > { %2134 = vmatmul.mubr.msk.bf16.gmra.mrb[20].mxu0 %vm241_vm0, %v3744_v42 }
 0xb33   : > { %1889 = vmatprep.mubr.bf16.mxu0 %v4012_v8 }
 0xb3a   : > { %2135 = vmatmul.mubr.msk.bf16.gmra.mrb[24].mxu0 %vm241_vm0, %v3752_v54 }
 0xbfd   : > { %v1871_v39 = vpop.f32.mrb[16].mxu0  ;;  %v1901_v57 = vpop.f32.mrb[24].mxu1 }
 0xbfe   : > { %1910 = vst [vmem:[%s2896_s18] sm:$0xff] %v1871_v39  ;;  %v1873_v55 = vpop.f32.mrb[17].mxu0  ;;  %1922 = vst [vmem:[%s2896_s18 + $0x60] sm:$0xff] %v1901_v57  ;;  %v1903_v11 = vpop.f32.mrb[25].mxu1 }
 0xbff   : > { %1911 = vst [vmem:[%s2896_s18 + $0x8] sm:$0xff] %v1873_v55  ;;  %v1875_v32 = vpop.f32.mrb[18].mxu0  ;;  %1923 = vst [vmem:[%s2896_s18 + $0x68] sm:$0xff] %v1903_v11  ;;  %v1905_v42 = vpop.f32.mrb[26].mxu1 }
 0xc00   : > { %1912 = vst [vmem:[%s2896_s18 + $0x10] sm:$0xff] %v1875_v32  ;;  %v1877_v8 = vpop.f32.mrb[19].mxu0  ;;  %1924 = vst [vmem:[%s2896_s18 + $0x70] sm:$0xff] %v1905_v42  ;;  %v1907_v54 = vpop.f32.mrb[27].mxu1 }
 0xc01   : > { %1913 = vst [vmem:[%s2896_s18 + $0x18] sm:$0xff] %v1877_v8  ;;  %1925 = vst [vmem:[%s2896_s18 + $0x78] sm:$0xff] %v1907_v54 }
 0xc05   : > { %v1881_v59 = vpop.f32.mrb[20].mxu0 }
 0xc06   : > { %1914 = vst [vmem:[%s2896_s18 + $0x20] sm:$0xff] %v1881_v59  ;;  %v1883_v18 = vpop.f32.mrb[21].mxu0 }
 0xc07   : > { %1915 = vst [vmem:[%s2896_s18 + $0x28] sm:$0xff] %v1883_v18  ;;  %v1885_v19 = vpop.f32.mrb[22].mxu0 }
 0xc08   : > { %1916 = vst [vmem:[%s2896_s18 + $0x30] sm:$0xff] %v1885_v19  ;;  %v1887_v41 = vpop.f32.mrb[23].mxu0 }
 0xc09   : > { %1917 = vst [vmem:[%s2896_s18 + $0x38] sm:$0xff] %v1887_v41 }
 0xc0d   : > { %v1891_v22 = vpop.f32.mrb[24].mxu0 }
 0xc0e   : > { %1918 = vst [vmem:[%s2896_s18 + $0x40] sm:$0xff] %v1891_v22  ;;  %v1893_v51 = vpop.f32.mrb[25].mxu0 }
 0xc0f   : > { %1919 = vst [vmem:[%s2896_s18 + $0x48] sm:$0xff] %v1893_v51  ;;  %v1895_v62 = vpop.f32.mrb[26].mxu0 }
 0xc10   : > { %1920 = vst [vmem:[%s2896_s18 + $0x50] sm:$0xff] %v1895_v62  ;;  %v1897_v40 = vpop.f32.mrb[27].mxu0 }
 0xc11   : > { %1921 = vst [vmem:[%s2896_s18 + $0x58] sm:$0xff] %v1897_v40 }
 0xc12 PF: > { %s12_s9 = sadd.s32 1, %s2762_s9  }
 0xc13   : > { %p9_p5 = scmp.ge.s32.totalorder %s12_s9, 4  }
 0xc15   :  { %11 = sbr.rel (!%p9_p5) target bundleno = 1 (0x1), region = 79 }

</bundles_post_ra>
